<compile_context>
chip_gen: v7x
topology: tpu7x:2x2x1
jax: 0.10.0
libtpu: 0.0.40
codegen_flags: <defaults>
</compile_context>

<pallas_src>
import jax
import jax.numpy as jnp
from jax.experimental import pallas as pl
from jax.experimental.pallas import tpu as pltpu


def skipgram_kernel(tgt_ref, cn_ref, w_in_ref, b_in_ref, w_out_ref, b_out_ref,
                    out_ref):
    tb = tgt_ref.shape[0]                 # target rows in this tile
    s = cn_ref.shape[0] // tb             # scores per row = 1 + num_negatives

    # gnn_in(target): bf16 MXU matmul, f32 accumulation, f32 bias.
    emb_t = jnp.dot(tgt_ref[...], w_in_ref[...],
                    preferred_element_type=jnp.float32) + b_in_ref[...]
    d = emb_t.shape[1]

    # gnn_out(context & negatives): single matmul over the interleaved rows
    # (one weight push, one bias broadcast), no in-kernel concat.
    emb_cn = jnp.dot(cn_ref[...], w_out_ref[...],
                     preferred_element_type=jnp.float32) + b_out_ref[...]

    # One fused broadcast-multiply-reduce for all 1+N scores:
    #   scores[b, 0]  = <emb_target[b], emb_context[b]>      (pos_score)
    #   scores[b, j>0]= <emb_target[b], emb_negative[b, j-1]> (neg_score)
    scores = jnp.sum(emb_cn.reshape(tb, s, d) * emb_t[:, None, :], axis=-1)

    # Lane-dense store: pad the score rows out to the 128-multiple block width.
    pad = out_ref.shape[1] - s
    if pad > 0:
        scores = jnp.concatenate(
            [scores, jnp.zeros((tb, pad), dtype=scores.dtype)], axis=1)
    out_ref[...] = scores


def _pick_tile_b(batch, f_in, d_emb, n_neg, out_cols, vmem_budget):
    """Largest multiple-of-8 divisor of `batch` that fits the VMEM budget,
    capped at 256 (safe for v7x's 64 MiB) and at batch//2 so the grid has
    >= 2 steps (keeps both v7x TensorCores busy)."""
    per_row = (4 * (2 + n_neg) * f_in          # bf16 activation blocks, x2 buffers
               + 8 * out_cols                  # f32 padded score block, x2 buffers
               + 4 * d_emb * (10 + n_neg))     # f32 embeddings + broadcast product
    fixed = 4 * f_in * d_emb + 16 * d_emb      # resident weights + biases
    budget = max(vmem_budget - fixed, 8 * per_row)
    cap = min(256, (budget // per_row) // 8 * 8)
    cap = max(cap, 8)
    if batch >= 16:
        cap = min(cap, max(batch // 2, 8))
    start = (min(cap, batch) // 8) * 8
    for t in range(start, 7, -8):
        if batch % t == 0:
            return t
    return batch                               # full-batch block (still legal)


def skipgram_forward(target, context, negatives,
                     w_in, b_in, w_out, b_out, *, num_negatives):
    B, F_in = target.shape
    D = w_in.shape[1]
    N = num_negatives
    assert negatives.shape[0] == B * N

    # Pack context + negatives per batch row (ctx, neg_0, ..., neg_{N-1}) into
    # one HBM stream; fold the bf16 cast into the same pass.
    cn = jnp.concatenate(
        [context.astype(jnp.bfloat16).reshape(B, 1, F_in),
         negatives.astype(jnp.bfloat16).reshape(B, N, F_in)],
        axis=1).reshape(B * (1 + N), F_in)
    tgt = target.astype(jnp.bfloat16)
    w_in_b = w_in.astype(jnp.bfloat16)
    w_out_b = w_out.astype(jnp.bfloat16)
    b_in_f = b_in.astype(jnp.float32).reshape(1, D)
    b_out_f = b_out.astype(jnp.float32).reshape(1, D)

    S = 1 + N
    out_cols = ((S + 127) // 128) * 128        # lane-dense output block width

    try:
        vmem_cap = int(pltpu.get_tpu_info().vmem_capacity_bytes)
        vmem_limit = vmem_cap * 3 // 4
    except Exception:
        vmem_limit = None

    tile_b = _pick_tile_b(B, F_in, D, N, out_cols,
                          vmem_limit if vmem_limit else 32 * 1024 * 1024)
    grid = (B // tile_b,)

    cp_kwargs = dict(dimension_semantics=("parallel",))
    if vmem_limit:
        cp_kwargs["vmem_limit_bytes"] = int(vmem_limit)

    def run(single_buffer_weights):
        resident = (dict(pipeline_mode=pl.Buffered(1))
                    if single_buffer_weights else {})
        in_specs = [
            pl.BlockSpec((tile_b, F_in), lambda i: (i, 0)),            # target
            pl.BlockSpec((tile_b * S, F_in), lambda i: (i, 0)),        # ctx+negs
            pl.BlockSpec((F_in, D), lambda i: (0, 0), **resident),     # w_in
            pl.BlockSpec((1, D), lambda i: (0, 0), **resident),        # b_in
            pl.BlockSpec((F_in, D), lambda i: (0, 0), **resident),     # w_out
            pl.BlockSpec((1, D), lambda i: (0, 0), **resident),        # b_out
        ]
        return pl.pallas_call(
            skipgram_kernel,
            grid=grid,
            in_specs=in_specs,
            out_specs=pl.BlockSpec((tile_b, out_cols), lambda i: (i, 0)),
            out_shape=jax.ShapeDtypeStruct((B, out_cols), jnp.float32),
            compiler_params=pltpu.CompilerParams(**cp_kwargs),
        )(tgt, cn, w_in_b, b_in_f, w_out_b, b_out_f)

    try:
        scores = run(True)
    except Exception:
        # pipeline_mode=pl.Buffered(1) not supported on this JAX build; retry
        # with default double-buffered (still resident) weights.
        scores = run(False)

    return scores[:, 0], scores[:, 1:S]        # pos_score [B], neg_score [B, N]


def reference_forward(target, context, negatives,
                      w_in, b_in, w_out, b_out, *, num_negatives):
    # Mirrors the kernel's dtype path: bf16 matmul inputs, f32 accumulation.
    wi = w_in.astype(jnp.bfloat16)
    wo = w_out.astype(jnp.bfloat16)
    emb_t = jnp.dot(target.astype(jnp.bfloat16), wi,
                    preferred_element_type=jnp.float32) + b_in
    emb_c = jnp.dot(context.astype(jnp.bfloat16), wo,
                    preferred_element_type=jnp.float32) + b_out
    emb_n = jnp.dot(negatives.astype(jnp.bfloat16), wo,
                    preferred_element_type=jnp.float32) + b_out
    pos = jnp.sum(emb_t * emb_c, axis=1)
    emb_n = emb_n.reshape(-1, num_negatives, emb_t.shape[1])
    neg = jnp.einsum('bnd,bd->bn', emb_n, emb_t)
    return pos, neg


if __name__ == "__main__":
    # hparams (small, deterministic): num_negatives=4, gnn_dim_embed=128
    B = 16            # batch of (target, context) pairs (2 grid steps of 8)
    F_IN = 32         # input node-feature dim
    D_EMB = 128       # gnn_dim_embed
    NUM_NEG = 4       # num_negatives

    key = jax.random.PRNGKey(0)
    k1, k2, k3, k4, k5 = jax.random.split(key, 5)

    target = jax.random.normal(k1, (B, F_IN), dtype=jnp.float32)
    context = jax.random.normal(k2, (B, F_IN), dtype=jnp.float32)
    negatives = jax.random.normal(k3, (B * NUM_NEG, F_IN), dtype=jnp.float32)

    # Deterministic "GNN" parameters (gnn_in / gnn_out).
    w_in = jax.random.normal(k4, (F_IN, D_EMB), dtype=jnp.float32) * 0.05
    b_in = jnp.full((1, D_EMB), 0.01, dtype=jnp.float32)
    w_out = jax.random.normal(k5, (F_IN, D_EMB), dtype=jnp.float32) * 0.05
    b_out = jnp.full((1, D_EMB), -0.01, dtype=jnp.float32)

    pos_score, neg_score = skipgram_forward(
        target, context, negatives, w_in, b_in, w_out, b_out,
        num_negatives=NUM_NEG)
    jax.block_until_ready((pos_score, neg_score))

    # Check against a plain-JAX reference (same bf16-matmul / f32-accum path).
    pos_ref, neg_ref = reference_forward(
        target, context, negatives, w_in, b_in, w_out, b_out,
        num_negatives=NUM_NEG)
    assert pos_score.shape == (B,)
    assert neg_score.shape == (B, NUM_NEG)
    assert jnp.allclose(pos_score, pos_ref, atol=1e-2, rtol=1e-2)
    assert jnp.allclose(neg_score, neg_ref, atol=1e-2, rtol=1e-2)

    print("KERNEL_OK")
</pallas_src>

<mosaic_0001>
module attributes {stable_mosaic.version = 11 : i64} {
  func.func @skipgram_kernel(%arg0: i32, %arg1: memref<8x32xbf16, #tpu.memory_space<vmem>>, %arg2: memref<40x32xbf16, #tpu.memory_space<vmem>>, %arg3: memref<32x128xbf16, #tpu.memory_space<vmem>>, %arg4: memref<1x128xf32, #tpu.memory_space<vmem>>, %arg5: memref<32x128xbf16, #tpu.memory_space<vmem>>, %arg6: memref<1x128xf32, #tpu.memory_space<vmem>>, %arg7: memref<8x128xf32, #tpu.memory_space<vmem>>) attributes {dimension_semantics = [#tpu.dimension_semantics<parallel>], iteration_bounds = array<i64: 2>, scalar_prefetch = 0 : i64, scratch_operands = 0 : i64, tpu.core_type = #tpu.core_type<tc>, window_params = [{transform_indices = @transform_0, window_bounds = array<i64: 8, 32>}, {transform_indices = @transform_1, window_bounds = array<i64: 40, 32>}, {pipeline_mode = #tpu.pipeline_mode<synchronous>, transform_indices = @transform_2, window_bounds = array<i64: 32, 128>}, {pipeline_mode = #tpu.pipeline_mode<synchronous>, transform_indices = @transform_3, window_bounds = array<i64: 1, 128>}, {pipeline_mode = #tpu.pipeline_mode<synchronous>, transform_indices = @transform_4, window_bounds = array<i64: 32, 128>}, {pipeline_mode = #tpu.pipeline_mode<synchronous>, transform_indices = @transform_5, window_bounds = array<i64: 1, 128>}, {transform_indices = @transform_6, window_bounds = array<i64: 8, 128>}]} {
    %c0 = arith.constant 0 : index
    %c0_0 = arith.constant 0 : index
    %0 = vector.load %arg1[%c0, %c0_0] : memref<8x32xbf16, #tpu.memory_space<vmem>>, vector<8x32xbf16>
    %c0_1 = arith.constant 0 : index
    %c0_2 = arith.constant 0 : index
    %1 = vector.load %arg3[%c0_1, %c0_2] : memref<32x128xbf16, #tpu.memory_space<vmem>>, vector<32x128xbf16>
    %cst = arith.constant dense<0.000000e+00> : vector<8x128xf32>
    %2 = tpu.matmul %0, %1, %cst {dimension_numbers = #tpu.dot_dimension_numbers<[1], [0], [0], [1], [0, 0, 1, 1], [], []>} : vector<8x32xbf16>, vector<32x128xbf16>, vector<8x128xf32> -> vector<8x128xf32>
    %c0_3 = arith.constant 0 : index
    %c0_4 = arith.constant 0 : index
    %3 = vector.load %arg4[%c0_3, %c0_4] : memref<1x128xf32, #tpu.memory_space<vmem>>, vector<1x128xf32>
    %4 = vector.broadcast %3 : vector<1x128xf32> to vector<8x128xf32>
    %5 = arith.addf %2, %4 : vector<8x128xf32>
    %c0_5 = arith.constant 0 : index
    %c0_6 = arith.constant 0 : index
    %6 = vector.load %arg2[%c0_5, %c0_6] : memref<40x32xbf16, #tpu.memory_space<vmem>>, vector<40x32xbf16>
    %c0_7 = arith.constant 0 : index
    %c0_8 = arith.constant 0 : index
    %7 = vector.load %arg5[%c0_7, %c0_8] : memref<32x128xbf16, #tpu.memory_space<vmem>>, vector<32x128xbf16>
    %cst_9 = arith.constant dense<0.000000e+00> : vector<40x128xf32>
    %8 = tpu.matmul %6, %7, %cst_9 {dimension_numbers = #tpu.dot_dimension_numbers<[1], [0], [0], [1], [0, 0, 1, 1], [], []>} : vector<40x32xbf16>, vector<32x128xbf16>, vector<40x128xf32> -> vector<40x128xf32>
    %c0_10 = arith.constant 0 : index
    %c0_11 = arith.constant 0 : index
    %9 = vector.load %arg6[%c0_10, %c0_11] : memref<1x128xf32, #tpu.memory_space<vmem>>, vector<1x128xf32>
    %10 = vector.broadcast %9 : vector<1x128xf32> to vector<40x128xf32>
    %11 = arith.addf %8, %10 : vector<40x128xf32>
    %12 = vector.shape_cast %11 : vector<40x128xf32> to vector<8x5x128xf32>
    %13 = vector.shape_cast %5 : vector<8x128xf32> to vector<8x1x128xf32>
    %14 = vector.broadcast %13 : vector<8x1x128xf32> to vector<8x5x128xf32>
    %15 = arith.mulf %12, %14 : vector<8x5x128xf32>
    %cst_12 = arith.constant dense<0.000000e+00> : vector<8x5xf32>
    %16 = vector.multi_reduction <add>, %15, %cst_12 [2] : vector<8x5x128xf32> to vector<8x5xf32>
    %cst_13 = arith.constant 0.000000e+00 : f32
    %17 = vector.broadcast %cst_13 : f32 to vector<8x123xf32>
    %18 = tpu.concatenate %16, %17 in 1 : vector<8x5xf32>, vector<8x123xf32> -> vector<8x128xf32>
    %c0_14 = arith.constant 0 : index
    %c0_15 = arith.constant 0 : index
    %19 = vector.load %arg7[%c0_14, %c0_15] : memref<8x128xf32, #tpu.memory_space<vmem>>, vector<8x128xf32>
    tpu.vector_store %arg7[%c0_14, %c0_15], %18 {strides = array<i32>} : memref<8x128xf32, #tpu.memory_space<vmem>>, vector<8x128xf32>,
    return
  }
  func.func @transform_0(%arg0: i32) -> (i32, i32) {
    %c0_i32 = arith.constant 0 : i32
    %c0_i32_0 = arith.constant 0 : i32
    return %arg0, %c0_i32 : i32, i32
  }
  func.func @transform_1(%arg0: i32) -> (i32, i32) {
    %c0_i32 = arith.constant 0 : i32
    %c0_i32_0 = arith.constant 0 : i32
    return %arg0, %c0_i32 : i32, i32
  }
  func.func @transform_2(%arg0: i32) -> (i32, i32) {
    %c0_i32 = arith.constant 0 : i32
    %c0_i32_0 = arith.constant 0 : i32
    %c0_i32_1 = arith.constant 0 : i32
    return %c0_i32, %c0_i32_0 : i32, i32
  }
  func.func @transform_3(%arg0: i32) -> (i32, i32) {
    %c0_i32 = arith.constant 0 : i32
    %c0_i32_0 = arith.constant 0 : i32
    %c0_i32_1 = arith.constant 0 : i32
    return %c0_i32, %c0_i32_0 : i32, i32
  }
  func.func @transform_4(%arg0: i32) -> (i32, i32) {
    %c0_i32 = arith.constant 0 : i32
    %c0_i32_0 = arith.constant 0 : i32
    %c0_i32_1 = arith.constant 0 : i32
    return %c0_i32, %c0_i32_0 : i32, i32
  }
  func.func @transform_5(%arg0: i32) -> (i32, i32) {
    %c0_i32 = arith.constant 0 : i32
    %c0_i32_0 = arith.constant 0 : i32
    %c0_i32_1 = arith.constant 0 : i32
    return %c0_i32, %c0_i32_0 : i32, i32
  }
  func.func @transform_6(%arg0: i32) -> (i32, i32) {
    %c0_i32 = arith.constant 0 : i32
    %c0_i32_0 = arith.constant 0 : i32
    return %arg0, %c0_i32 : i32, i32
  }
}

module attributes {stable_mosaic.version = 11 : i64} {
  func.func @skipgram_kernel(%arg0: i32, %arg1: memref<8x32xbf16, #tpu.memory_space<vmem>>, %arg2: memref<40x32xbf16, #tpu.memory_space<vmem>>, %arg3: memref<32x128xbf16, #tpu.memory_space<vmem>>, %arg4: memref<1x128xf32, #tpu.memory_space<vmem>>, %arg5: memref<32x128xbf16, #tpu.memory_space<vmem>>, %arg6: memref<1x128xf32, #tpu.memory_space<vmem>>, %arg7: memref<8x128xf32, #tpu.memory_space<vmem>>) attributes {dimension_semantics = [#tpu.dimension_semantics<parallel>], iteration_bounds = array<i64: 2>, scalar_prefetch = 0 : i64, scratch_operands = 0 : i64, tpu.core_type = #tpu.core_type<tc>, window_params = [{transform_indices = @transform_0, window_bounds = array<i64: 8, 32>}, {transform_indices = @transform_1, window_bounds = array<i64: 40, 32>}, {pipeline_mode = #tpu.pipeline_mode<synchronous>, transform_indices = @transform_2, window_bounds = array<i64: 32, 128>}, {pipeline_mode = #tpu.pipeline_mode<synchronous>, transform_indices = @transform_3, window_bounds = array<i64: 1, 128>}, {pipeline_mode = #tpu.pipeline_mode<synchronous>, transform_indices = @transform_4, window_bounds = array<i64: 32, 128>}, {pipeline_mode = #tpu.pipeline_mode<synchronous>, transform_indices = @transform_5, window_bounds = array<i64: 1, 128>}, {transform_indices = @transform_6, window_bounds = array<i64: 8, 128>}]} {
    %c0 = arith.constant 0 : index
    %c0_0 = arith.constant 0 : index
    %0 = vector.load %arg1[%c0, %c0_0] : memref<8x32xbf16, #tpu.memory_space<vmem>>, vector<8x32xbf16>
    %c0_1 = arith.constant 0 : index
    %c0_2 = arith.constant 0 : index
    %1 = vector.load %arg3[%c0_1, %c0_2] : memref<32x128xbf16, #tpu.memory_space<vmem>>, vector<32x128xbf16>
    %cst = arith.constant dense<0.000000e+00> : vector<8x128xf32>
    %2 = tpu.matmul %0, %1, %cst {dimension_numbers = #tpu.dot_dimension_numbers<[1], [0], [0], [1], [0, 0, 1, 1], [], []>} : vector<8x32xbf16>, vector<32x128xbf16>, vector<8x128xf32> -> vector<8x128xf32>
    %c0_3 = arith.constant 0 : index
    %c0_4 = arith.constant 0 : index
    %3 = vector.load %arg4[%c0_3, %c0_4] : memref<1x128xf32, #tpu.memory_space<vmem>>, vector<1x128xf32>
    %4 = vector.broadcast %3 : vector<1x128xf32> to vector<8x128xf32>
    %5 = arith.addf %2, %4 : vector<8x128xf32>
    %c0_5 = arith.constant 0 : index
    %c0_6 = arith.constant 0 : index
    %6 = vector.load %arg2[%c0_5, %c0_6] : memref<40x32xbf16, #tpu.memory_space<vmem>>, vector<40x32xbf16>
    %c0_7 = arith.constant 0 : index
    %c0_8 = arith.constant 0 : index
    %7 = vector.load %arg5[%c0_7, %c0_8] : memref<32x128xbf16, #tpu.memory_space<vmem>>, vector<32x128xbf16>
    %cst_9 = arith.constant dense<0.000000e+00> : vector<40x128xf32>
    %8 = tpu.matmul %6, %7, %cst_9 {dimension_numbers = #tpu.dot_dimension_numbers<[1], [0], [0], [1], [0, 0, 1, 1], [], []>} : vector<40x32xbf16>, vector<32x128xbf16>, vector<40x128xf32> -> vector<40x128xf32>
    %c0_10 = arith.constant 0 : index
    %c0_11 = arith.constant 0 : index
    %9 = vector.load %arg6[%c0_10, %c0_11] : memref<1x128xf32, #tpu.memory_space<vmem>>, vector<1x128xf32>
    %10 = vector.broadcast %9 : vector<1x128xf32> to vector<40x128xf32>
    %11 = arith.addf %8, %10 : vector<40x128xf32>
    %12 = vector.shape_cast %11 : vector<40x128xf32> to vector<8x5x128xf32>
    %13 = vector.shape_cast %5 : vector<8x128xf32> to vector<8x1x128xf32>
    %14 = vector.broadcast %13 : vector<8x1x128xf32> to vector<8x5x128xf32>
    %15 = arith.mulf %12, %14 : vector<8x5x128xf32>
    %cst_12 = arith.constant dense<0.000000e+00> : vector<8x5xf32>
    %16 = vector.multi_reduction <add>, %15, %cst_12 [2] : vector<8x5x128xf32> to vector<8x5xf32>
    %cst_13 = arith.constant 0.000000e+00 : f32
    %17 = vector.broadcast %cst_13 : f32 to vector<8x123xf32>
    %18 = tpu.concatenate %16, %17 in 1 : vector<8x5xf32>, vector<8x123xf32> -> vector<8x128xf32>
    %c0_14 = arith.constant 0 : index
    %c0_15 = arith.constant 0 : index
    %19 = vector.load %arg7[%c0_14, %c0_15] : memref<8x128xf32, #tpu.memory_space<vmem>>, vector<8x128xf32>
    tpu.vector_store %arg7[%c0_14, %c0_15], %18 {strides = array<i32>} : memref<8x128xf32, #tpu.memory_space<vmem>>, vector<8x128xf32>,
    return
  }
  func.func @transform_0(%arg0: i32) -> (i32, i32) {
    %c0_i32 = arith.constant 0 : i32
    %c0_i32_0 = arith.constant 0 : i32
    return %arg0, %c0_i32 : i32, i32
  }
  func.func @transform_1(%arg0: i32) -> (i32, i32) {
    %c0_i32 = arith.constant 0 : i32
    %c0_i32_0 = arith.constant 0 : i32
    return %arg0, %c0_i32 : i32, i32
  }
  func.func @transform_2(%arg0: i32) -> (i32, i32) {
    %c0_i32 = arith.constant 0 : i32
    %c0_i32_0 = arith.constant 0 : i32
    %c0_i32_1 = arith.constant 0 : i32
    return %c0_i32, %c0_i32_0 : i32, i32
  }
  func.func @transform_3(%arg0: i32) -> (i32, i32) {
    %c0_i32 = arith.constant 0 : i32
    %c0_i32_0 = arith.constant 0 : i32
    %c0_i32_1 = arith.constant 0 : i32
    return %c0_i32, %c0_i32_0 : i32, i32
  }
  func.func @transform_4(%arg0: i32) -> (i32, i32) {
    %c0_i32 = arith.constant 0 : i32
    %c0_i32_0 = arith.constant 0 : i32
    %c0_i32_1 = arith.constant 0 : i32
    return %c0_i32, %c0_i32_0 : i32, i32
  }
  func.func @transform_5(%arg0: i32) -> (i32, i32) {
    %c0_i32 = arith.constant 0 : i32
    %c0_i32_0 = arith.constant 0 : i32
    %c0_i32_1 = arith.constant 0 : i32
    return %c0_i32, %c0_i32_0 : i32, i32
  }
  func.func @transform_6(%arg0: i32) -> (i32, i32) {
    %c0_i32 = arith.constant 0 : i32
    %c0_i32_0 = arith.constant 0 : i32
    return %arg0, %c0_i32 : i32, i32
  }
}

</mosaic_0001>

<bundles_post_ra>
// kernel: tpu_custom_call.1
= control target key start
LH: loop header
LB: loop body
LE: loop exit
PB: predicated region body
PF: predicated region fallthrough
CT: control target
= control target key end

     0   :  { %11 = vsyncpa [#allocation3], 0  ;;  %s2462_s0 = inlined_call_operand.vmem [shape: bf16[16,32], index: 0, kind: input, shape index: {}]   ;;  %s2463_s1 = inlined_call_operand.vmem [shape: bf16[80,32], index: 1, kind: input, shape index: {}]   ;;  %s2464_s2 = inlined_call_operand.vmem [shape: bf16[32,128], index: 2, kind: input, shape index: {}]   ;;  %s2465_s3 = inlined_call_operand.vmem [shape: f32[1,128], index: 3, kind: input, shape index: {}]   ;;  %s2466_s4 = inlined_call_operand.vmem [shape: bf16[32,128], index: 4, kind: input, shape index: {}]   ;;  %s2467_s5 = inlined_call_operand.vmem [shape: f32[1,128], index: 5, kind: input, shape index: {}]   ;;  %s2468_s6 = inlined_call_operand.hbm [shape: f32[16,128], index: 6, kind: output, shape index: {}]  }
   0x1   :  { %13 = vsyncpa [#allocation3 + $0x1], 0  ;;  %s1950_s21 = smov 0   ;;  %s1952_s22 = smov 0  }
   0x2   :  { %s1954_s23 = smov 0   ;;  %s1956_s24 = smov 0  }
   0x3 LB: > { %s1971_s25 = sadd.s32 4294967295, %s1909_s24   ;;  %s1738_s26 = sadd.s32 4294967294, %s1909_s24   ;;  %s1909_s24 = sphi %s1956_s24, %s2489_s24   ;;  %s1905_s23 = sphi %s1954_s23, %s2488_s23   ;;  %s1901_s22 = sphi %s1952_s22, %s2487_s22   ;;  %s1897_s21 = sphi %s1950_s21, %s2486_s21  }
   0x4   : > { %s1975_s27 = sadd.s32 1, %s1909_s24   ;;  %s162_s28 = sadd.s32 1, %s1905_s23 }
   0x5   : > { %s159_s29 = ssub.s32 %s1909_s24, %s1975_s27  ;;  %p172_p0 = scmp.ne.s32.totalorder %s1905_s23, %s1901_s22 }
   0x6   : > { %p160_p1 = scmp.eq.s32.totalorder %s159_s29, 0  ;;  %p173_p2 = scmp.eq.s32.totalorder %s1971_s25, 1 }
   0x7   : > { %p178_p3 = scmp.ne.s32.totalorder %s1901_s22, %s1897_s21  ;;  %p179_p4 = scmp.eq.s32.totalorder %s1738_s26, 1 }
   0x8   : > { %s1986_s30 = scalar_select %p160_p1, %s1905_s23, %s162_s28  }
   0x9   : > { %p1988_p5 = por %p173_p2, %p172_p0  ;;  %p1992_p6 = por %p179_p4, %p178_p3 }
   0xa   : > { %p1741_p7 = scmp.ge.s32.totalorder %s1909_s24, 1  ;;  %p225_p8 = scmp.lt.s32.totalorder %s1909_s24, 3 }
   0xc   : > { %p226_p9 = pnand %p1741_p7, %p225_p8 }
   0xe   : > { %229 = sbr.rel (%p226_p9) target bundleno = 483 (0x1e3), region = 44 }
  0x15   : > { %v1840_v0 = vld [vmem:[%s2464_s2] sm:$0xff]   ;;  %v1911_v1 = vmov 0.0   ;;  %v1842_v3 = vld [vmem:[%s2464_s2 + $0x8] sm:$0xff]   ;;  %vm1912_vm0 = vmmov 0   ;;  %p259_p10 = scmp.lt.s32.totalorder %s1971_s25, 1  ;;  %s263_s18 = smul.u32 5, %s1971_s25  ;;  %v2469_v11 = vlaneseq }
  0x16   : > { %1770 = vmatprep.subr.bf16.mxu0 %v1911_v1  ;;  %1794 = vmatprep.subr.bf16.mxu1 %v1911_v1  ;;  %v1841_v2 = vld [vmem:[%s2466_s4] sm:$0xff]   ;;  %v1843_v4 = vld [vmem:[%s2466_s4 + $0x8] sm:$0xff]   ;;  %vm294_vm1 = vcmask 261120   ;;  %v1913_v9 = vmov 1966171168   ;;  %vm1568_vm2 = vcmask 1044480  }
  0x17   : > { %1771 = vmatpush3.bf16.msra.mxu0 %v1840_v0  ;;  %1774 = vmatprep.mubr.msk.bf16.mxu0 %vm1912_vm0, %v1911_v1  ;;  %s260_s17 = scalar_select %p259_p10, %s1971_s25, 1  ;;  %v451_v10 = vunpack.c.l.s4 %v1913_v9  ;;  %v2028_v13 = vshrl.u32 %v2469_v11, 7  ;;  %v1745_v14 = vld [vmem:[%s2465_s3] ss:$0 sm:$0xff]  ;;  %vm1635_vm3 = vcmask 1041409   ;;  %vm1637_vm4 = vcmask 1042434  }
  0x18   : > { %1796 = vmatpush3.bf16.msra.mxu1 %v1841_v2  ;;  %1772 = vmatprep.subr.bf16.mxu0 %v1911_v1  ;;  %p264_p11 = scmp.lt.s32.totalorder %s263_s18, 9  ;;  %v2043_v27 = vld [vmem:[%s2467_s5] ss:$0 sm:$0xff]  ;;  %s256_s16 = sand.u32 1, %s1901_s22   ;;  %vm1639_vm5 = vcmask 1043459   ;;  %vm1641_vm6 = vcmask 1044484  }
  0x19   : > { %1795 = vmatprep.subr.bf16.mxu1 %v1911_v1  ;;  %1786 = vmatprep.mubr.msk.bf16.mxu1 %vm1912_vm0, %v1911_v1  ;;  %s1743_s19 = sshll.u32 %s260_s17, 2  ;;  %v452_v12 = vunpack.c.0.s8 %v451_v10  ;;  %2473 = vst [vmem:[#allocation5_spill] sm:$0xff] %v2028_v13  ;;  %v786_v23 = vsub.s32 0, %v2028_v13  ;;  %s1742_s17 = sshll.u32 %s256_s16, 3  ;;  %vm1643_vm7 = vcmask 1045509   ;;  %vm1645_vm8 = vcmask 1046534  }
  0x1a   : > { %s262_s28 = scalar_lea.vmem %s2462_s0, %s1743_s19  ;;  %s2491_s18 = smov (!%p264_p11, %s263_s18), 9  ;;  %vm1647_vm9 = vcmask 1047559   ;;  %vm1650_vm10 = vcmask 39936  }
  0x1b   : > { %1773 = vmatpush3.bf16.msra.mxu0 %v1842_v3  ;;  %v270_v5 = vld [vmem:[%s262_s28] sm:$0xf]  ;;  %s1744_s29 = sshll.u32 %s2491_s18, 2  ;;  %v2034_v15 = vsub.s32 %v452_v12, %v2028_v13  ;;  %s1759_s18 = sshll.u32 %s1971_s25, 7 }
  0x1c   : > { %1797 = vmatpush3.bf16.msra.mxu1 %v1843_v4  ;;  %1778 = vmatprep.subr.bf16.mxu0 %v1911_v1  ;;  %s267_s11 = scalar_lea.vmem %s2463_s1, %s1744_s29  ;;  %s258_s19 = scalar_lea.vmem [#allocation2], %s1742_s17 }
  0x1d   : > { %v1844_v6 = vld [vmem:[%s267_s11 + $0x8] sm:$0xff]   ;;  %v1845_v7 = vld [vmem:[%s267_s11] sm:$0xff]   ;;  %v1846_v8 = vld [vmem:[%s267_s11 + $0x10] ss:$0 sps:$4 sm:$0xff]   ;;  %s1667_s20 = sshll.u32 %s258_s19, 4  ;;  %s2418_s29 = scalar_lea.hbm %s2468_s6, %s1759_s18  ;;  %s2420_s20 = int_to_ptr.vmem [resolvable:$true] %s1667_s20 }
  0x1e   : > { %1775 = vmatmul.mubr.msk.bf16.vlgmr.msra.gmra.mrb[0].mxu0 %vm294_vm1, %v270_v5  ;;  %s1654_s9 = scalar_lea.sflag [#allocation3], %s256_s16  ;;  %s1847_s25 = scalar_lea.vmem %s2420_s20, 128 }
  0x1f   : > { %1779 = vmatpush3.bf16.msra.mxu0 %v1841_v2  ;;  %1782 = vmatprep.mubr.msk.bf16.mxu0 %vm1912_vm0, %v1911_v1  ;;  %p1848_p12 = scmp.ne.s32.totalorder %s2420_s20, %s1847_s25  ;;  %s1914_s10 = smov [#allocation2]  }
  0x20   : > { %1780 = vmatprep.subr.bf16.mxu0 %v1911_v1  ;;  %1787 = vmatmul.mubr.msk.bf16.vlgmr.msra.gmra.mrb[0].mxu1 %vm294_vm1, %v1844_v6  ;;  %s1851_s11 = sshll.u32 %s1914_s10, 4  ;;  %s1852_s11 = int_to_ptr.vmem [resolvable:$false] %s1851_s11 }
  0x21   : > { %1790 = vmatprep.mubr.msk.bf16.mxu1 %vm1912_vm0, %v1911_v1  ;;  %p1849_p13 = pnand %p1848_p12, %p1988_p5  ;;  %s1853_s12 = scalar_lea.vmem %s1852_s11, 256 }
  0x22   : > { %p1854_p1 = scmp.lt.s32.totalorder %s2420_s20, %s1852_s11  ;;  %p1855_p2 = scmp.lt.s32.totalorder %s1853_s12, %s1847_s25 }
  0x23   : > { %1781 = vmatpush3.bf16.msra.mxu0 %v1843_v4  ;;  %p1850_p0 = pneg %p1849_p13 }
  0x24   : > { %p1856_p3 = por %p1855_p2, %p1854_p1 }
  0x26   : > { %1783 = vmatmul.mubr.msk.bf16.vlgmr.msra.gmra.mrb[4].mxu0 %vm294_vm1, %v1845_v7  ;;  %p1857_p4 = pnand %p1856_p3, %p1850_p0 }
  0x28   : > { %1791 = vmatmul.mubr.msk.bf16.gmra.mrb[4].mxu1 %vm294_vm1, %v1846_v8 }
  0xf1   : > { %v332_v16 = vpop.f32.mrb[0].mxu0 }
  0xf2   : > { %v333_v17 = vadd.f32 %v1745_v14, %v332_v16  ;;  %v1776_v18 = vpop.f32.mrb[1].mxu0 }
  0xf3   : > { %v335_v19 = vpop.f32.mrb[2].mxu0  ;;  %v430_v28 = vpop.f32.mrb[0].mxu1 }
  0xf4   : > { %v735_v20 = vcombine.high %v333_v17, %v333_v17  ;;  %v742_v21 = vrot.slane %v333_v17, %v2034_v15  ;;  %v1777_v22 = vpop.f32.mrb[3].mxu0  ;;  %v1788_v33 = vpop.f32.mrb[1].mxu1  ;;  %v431_v35 = vadd.f32 %v2043_v27, %v430_v28 }
  0xf5   : > { %v433_v36 = vpop.f32.mrb[2].mxu1 }
  0xf6   : > { %v749_v24 = vrot.slane %v735_v20, %v2034_v15  ;;  %v750_v25 = vcombine.high %v742_v21, %v742_v21  ;;  %v758_v26 = vrot.slane %v742_v21, %v2034_v15  ;;  %v1789_v42 = vpop.f32.mrb[3].mxu1  ;;  %v547_v5 = vcombine.high %v431_v35, %v431_v35 }
  0xf7   : > { %v554_v8 = vrot.slane %v431_v35, %v2034_v15  ;;  %v434_v16 = vadd.f32 %v2043_v27, %v433_v36 }
  0xf8   : > { %v751_v29 = vcombine.high %v749_v24, %v749_v24  ;;  %v765_v30 = vrot.slane %v749_v24, %v2034_v15  ;;  %v772_v31 = vrot.slane %v750_v25, %v2034_v15  ;;  %v780_v32 = vcombine.high %v758_v26, %v758_v26 }
  0xf9   : > { %v787_v34 = vrot.slane %v758_v26, %v786_v23  ;;  %v2048_v37 = vpop.f32.mrb[4].mxu0  ;;  %v561_v14 = vrot.slane %v547_v5, %v2034_v15  ;;  %v562_v20 = vcombine.high %v554_v8, %v554_v8  ;;  %v570_v21 = vrot.slane %v554_v8, %v2034_v15 }
  0xfa   : > { %v779_v38 = vrot.slane %v751_v29, %v2034_v15  ;;  %v781_v39 = vcombine.high %v765_v30, %v765_v30  ;;  %v782_v40 = vcombine.high %v772_v31, %v772_v31  ;;  %v2051_v41 = vrot.slane %v772_v31, %v786_v23  ;;  %v1784_v43 = vpop.f32.mrb[5].mxu0 }
  0xfb   : > { %v2053_v44 = vrot.slane %v780_v32, %v786_v23  ;;  %v803_v45 = vrot.slane %v765_v30, %v786_v23  ;;  %v816_v46 = vcombine.high %v787_v34, %v787_v34  ;;  %v2056_v47 = vrot.slane %v787_v34, %v2034_v15  ;;  %v2058_v48 = vpop.f32.mrb[6].mxu0  ;;  %v2090_v1 = vpop.f32.mrb[4].mxu1 }
  0xfc   : > { %v783_v49 = vcombine.high %v779_v38, %v779_v38  ;;  %v2060_v50 = vrot.slane %v782_v40, %v786_v23  ;;  %v2062_v51 = vrot.slane %v779_v38, %v786_v23  ;;  %v2064_v52 = vrot.slane %v781_v39, %v786_v23  ;;  %v1785_v53 = vpop.f32.mrb[7].mxu0  ;;  %v1792_v6 = vpop.f32.mrb[5].mxu1 }
  0xfd   : > { %v2067_v54 = vrot.slane %v816_v46, %v2034_v15  ;;  %v831_v55 = vcombine.high %v2056_v47, %v2056_v47  ;;  %v2073_v56 = vrot.slane %v2051_v41, %v2034_v15  ;;  %v2083_v60 = vrot.slane %v2053_v44, %v2034_v15  ;;  %v441_v12 = vpop.f32.mrb[6].mxu1 }
  0xfe   : > { %v2075_v57 = vrot.slane %v783_v49, %v786_v23  ;;  %v972_v63 = vcombine.high %v803_v45, %v803_v45  ;;  %v979_v0 = vrot.slane %v803_v45, %v2034_v15  ;;  %v2098_v4 = vrot.slane %v2064_v52, %v2034_v15  ;;  %v1793_v19 = vpop.f32.mrb[7].mxu1 }
  0xff   : > { %v870_v61 = vcombine.high %v2073_v56, %v2073_v56  ;;  %v909_v2 = vcombine.high %v2083_v60, %v2083_v60  ;;  %v940_v9 = vrot.slane %v2060_v50, %v2034_v15  ;;  %v1018_v18 = vrot.slane %v2062_v51, %v2034_v15 }
 0x100   : > { %v987_v7 = vcombine.high %v979_v0, %v979_v0  ;;  %v994_v10 = vrot.slane %v979_v0, %v2034_v15  ;;  %v986_v17 = vrot.slane %v972_v63, %v2034_v15  ;;  %v563_v24 = vcombine.high %v561_v14, %v561_v14 }
 0x101   : > { %v948_v22 = vcombine.high %v940_v9, %v940_v9  ;;  %v2111_v23 = vrot.slane %v940_v9, %v2034_v15  ;;  %v577_v25 = vrot.slane %v561_v14, %v2034_v15  ;;  %v2118_v29 = vrot.slane %v562_v20, %v2034_v15 }
 0x102   : > { %v2115_v26 = vrot.slane %v987_v7, %v2034_v15  ;;  %v1009_v28 = vcombine.high %v994_v10, %v994_v10  ;;  %v592_v30 = vcombine.high %v570_v21, %v570_v21  ;;  %v2124_v33 = vrot.slane %v563_v24, %v2034_v15 }
 0x103   : > { %v969_v31 = vrot.slane %v948_v22, %v2034_v15  ;;  %v970_v32 = vcombine.high %v2111_v23, %v2111_v23  ;;  %v593_v34 = vcombine.high %v577_v25, %v577_v25  ;;  %v2126_v35 = vmul.f32 %v994_v10, %v577_v25 }
 0x104   : > { %v596_v36 = vcombine.high %v434_v16, %v434_v16  ;;  %v2139_v45 = vmul.f32 %v2115_v26, %v2124_v33  ;;  %v603_v49 = vrot.slane %v434_v16, %v2034_v15  ;;  %v1001_v0 = vrot.slane %v986_v17, %v2034_v15 }
 0x105   : > { %v971_v39 = vcombine.high %v969_v31, %v969_v31  ;;  %v2130_v40 = vmul.f32 %v969_v31, %v570_v21  ;;  %v2133_v42 = vmul.f32 %v970_v32, %v2118_v29  ;;  %v2141_v46 = vmul.f32 %v1009_v28, %v593_v34 }
 0x106   : > { %v610_v63 = vrot.slane %v596_v36, %v2034_v15  ;;  %v1026_v5 = vcombine.high %v1018_v18, %v1018_v18  ;;  %v611_v6 = vcombine.high %v603_v49, %v603_v49  ;;  %v619_v7 = vrot.slane %v603_v49, %v2034_v15 }
 0x107   : > { %v2144_v53 = vmul.f32 %v971_v39, %v592_v30  ;;  %v1033_v8 = vrot.slane %v1018_v18, %v2034_v15  ;;  %v2152_v9 = vrot.slane %v2098_v4, %v2034_v15  ;;  %v423_v16 = vadd.f32 %v2043_v27, %v2048_v37 }
 0x108   : > { %v612_v10 = vcombine.high %v610_v63, %v610_v63  ;;  %v626_v12 = vrot.slane %v610_v63, %v2034_v15  ;;  %v1047_v14 = vrot.slane %v1026_v5, %v2034_v15  ;;  %v633_v17 = vrot.slane %v611_v6, %v2034_v15 }
 0x109   : > { %v641_v19 = vcombine.high %v619_v7, %v619_v7  ;;  %v1048_v20 = vcombine.high %v1033_v8, %v1033_v8  ;;  %v2159_v21 = vmul.f32 %v1001_v0, %v619_v7  ;;  %v449_v25 = vcombine.high %v423_v16, %v423_v16 }
 0x10a   : > { %v642_v22 = vcombine.high %v626_v12, %v626_v12  ;;  %v1049_v24 = vcombine.high %v1047_v14, %v1047_v14  ;;  %v643_v28 = vcombine.high %v633_v17, %v633_v17  ;;  %v2163_v30 = vmul.f32 %v1033_v8, %v633_v17 }
 0x10b   : > { %v2165_v31 = vmul.f32 %v1047_v14, %v641_v19  ;;  %v456_v32 = vrot.slane %v423_v16, %v2034_v15  ;;  %v2169_v37 = vrot.slane %v612_v10, %v2034_v15  ;;  %v463_v39 = vrot.slane %v449_v25, %v2034_v15 }
 0x10c   : > { %v2171_v34 = vmul.f32 %v1049_v24, %v626_v12  ;;  %v2174_v36 = vmul.f32 %v2152_v9, %v642_v22  ;;  %v2177_v49 = vmul.f32 %v1048_v20, %v643_v28  ;;  %v838_v5 = vrot.slane %v2056_v47, %v2034_v15 }
 0x10d   : > { %v464_v63 = vcombine.high %v456_v32, %v456_v32  ;;  %v472_v0 = vrot.slane %v456_v32, %v2034_v15  ;;  %v465_v6 = vcombine.high %v463_v39, %v463_v39  ;;  %v2183_v7 = vrot.slane %v463_v39, %v2034_v15 }
 0x10e   : > { %v852_v8 = vrot.slane %v831_v55, %v2034_v15  ;;  %v2191_v10 = vrot.slane %v2073_v56, %v2034_v15  ;;  %v853_v16 = vcombine.high %v838_v5, %v838_v5  ;;  %v2198_v17 = vrot.slane %v870_v61, %v2034_v15 }
 0x10f   : > { %v486_v12 = vrot.slane %v464_v63, %v2034_v15  ;;  %v494_v14 = vcombine.high %v472_v0, %v472_v0  ;;  %v493_v19 = vrot.slane %v465_v6, %v2034_v15  ;;  %v495_v47 = vcombine.high %v2183_v7, %v2183_v7 }
 0x110   : > { %v854_v55 = vcombine.high %v852_v8, %v852_v8  ;;  %v2203_v20 = vmul.f32 %v838_v5, %v472_v0  ;;  %v439_v28 = vadd.f32 %v2043_v27, %v2090_v1  ;;  %v1065_v39 = vcombine.high %v2098_v4, %v2098_v4 }
 0x111   : > { %v496_v22 = vcombine.high %v486_v12, %v486_v12  ;;  %v2205_v24 = vmul.f32 %v852_v8, %v486_v12  ;;  %v2207_v25 = vmul.f32 %v853_v16, %v494_v14  ;;  %v2214_v61 = vmul.f32 %v2191_v10, %v493_v19 }
 0x112   : > { %v2217_v32 = vmul.f32 %v2198_v17, %v495_v47  ;;  %v645_v5 = vcombine.high %v439_v28, %v439_v28  ;;  %v652_v1 = vrot.slane %v439_v28, %v2034_v15  ;;  %v2227_v6 = vrot.slane %v1065_v39, %v2034_v15 }
 0x113   : > { %v2221_v63 = vmul.f32 %v854_v55, %v496_v22  ;;  %v1248_v0 = vcombine.low %v2203_v20, %v2205_v24  ;;  %v1087_v8 = vcombine.high %v2152_v9, %v2152_v9  ;;  %v1096_v12 = vrot.slane %v2075_v57, %v2034_v15 }
 0x114   : > { %v426_v4 = vadd.f32 %v2043_v27, %v2058_v48  ;;  %v497_v14 = vcombine.high %v493_v19, %v493_v19  ;;  %v659_v16 = vrot.slane %v645_v5, %v2034_v15  ;;  %v660_v47 = vcombine.high %v652_v1, %v652_v1 }
 0x115   : > { %v2237_v55 = vrot.slane %v652_v1, %v2034_v15  ;;  %v1088_v20 = vcombine.high %v2227_v6, %v2227_v6  ;;  %v1104_v22 = vcombine.high %v1096_v12, %v1096_v12  ;;  %v1111_v24 = vrot.slane %v1096_v12, %v2034_v15 }
 0x116   : > { %v498_v9 = vcombine.high %v426_v4, %v426_v4  ;;  %v661_v28 = vcombine.high %v659_v16, %v659_v16  ;;  %v675_v39 = vrot.slane %v659_v16, %v2034_v15  ;;  %v682_v11 = vrot.slane %v660_v47, %v2034_v15 }
 0x117   : > { %v892_v27 = vcombine.high %v2191_v10, %v2191_v10  ;;  %v1125_v48 = vrot.slane %v1104_v22, %v2034_v15  ;;  %v1126_v19 = vcombine.high %v1111_v24, %v1111_v24  ;;  %v2248_v5 = vmul.f32 %v1087_v8, %v2237_v55 }
 0x118   : > { %v505_v1 = vrot.slane %v426_v4, %v2034_v15  ;;  %v2252_v56 = vrot.slane %v661_v28, %v2034_v15  ;;  %v691_v12 = vcombine.high %v675_v39, %v675_v39  ;;  %v692_v43 = vcombine.high %v682_v11, %v682_v11 }
 0x119   : > { %v2254_v38 = vmul.f32 %v1088_v20, %v682_v11  ;;  %v1127_v16 = vcombine.high %v1125_v48, %v1125_v48  ;;  %v2256_v47 = vmul.f32 %v1125_v48, %v675_v39  ;;  %v512_v10 = vrot.slane %v498_v9, %v2034_v15 }
 0x11a   : > { %v513_v62 = vcombine.high %v505_v1, %v505_v1  ;;  %v2259_v22 = vmul.f32 %v1111_v24, %v692_v43  ;;  %v2262_v8 = vmul.f32 %v1126_v19, %v2252_v56  ;;  %v521_v28 = vrot.slane %v505_v1, %v2034_v15 }
 0x11b   : > { %v2267_v18 = vmul.f32 %v1127_v16, %v691_v12  ;;  %v514_v11 = vcombine.high %v512_v10, %v512_v10  ;;  %v528_v20 = vrot.slane %v512_v10, %v2034_v15  ;;  %v893_v43 = vcombine.high %v2198_v17, %v2198_v17 }
 0x11c   : > { %v535_v39 = vrot.slane %v513_v62, %v2034_v15  ;;  %v543_v48 = vcombine.high %v521_v28, %v521_v28  ;;  %v916_v24 = vrot.slane %v2083_v60, %v2034_v15  ;;  %v930_v9 = vrot.slane %v909_v2, %v2034_v15 }
 0x11d   : > { %v2282_v1 = vrot.slane %v514_v11, %v2034_v15  ;;  %v1175_v62 = vmul.f32 %v892_v27, %v497_v14  ;;  %v1176_v4 = vmul.f32 %v893_v43, %v521_v28  ;;  %v544_v3 = vcombine.high %v528_v20, %v528_v20 }
 0x11e   : > { %v545_v12 = vcombine.high %v535_v39, %v535_v39  ;;  %v931_v16 = vcombine.high %v916_v24, %v916_v24  ;;  %v932_v10 = vcombine.high %v930_v9, %v930_v9  ;;  %v1178_v17 = vmul.f32 %v916_v24, %v543_v48 }
 0x11f   : > { %v845_v59 = vrot.slane %v2067_v54, %v2034_v15  ;;  %v1249_v60 = vcombine.low %v2207_v25, %v2221_v63  ;;  %v1288_v11 = vcombine.low %v1175_v62, %v1176_v4  ;;  %v1256_v13 = vrot.slane %v1248_v0, %v2034_v15 }
 0x120   : > { %v1179_v58 = vmul.f32 %v930_v9, %v545_v12  ;;  %v1180_v2 = vmul.f32 %v931_v16, %v528_v20  ;;  %v1181_v19 = vmul.f32 %v932_v10, %v2282_v1  ;;  %v2474_v28 = vcombine.high %v2053_v44, %v2053_v44 }
 0x121   : > { %v1172_v14 = vmul.f32 %v845_v59, %v2183_v7  ;;  %v1263_v27 = vrot.slane %v1249_v60, %v2034_v15  ;;  %v2475_v25 = vcombine.high %v2051_v41, %v2051_v41  ;;  %v1287_v4 = vcombine.low %v2214_v61, %v2217_v32 }
 0x122   : > { %v908_v48 = vrot.slane %v2474_v28, %v2034_v15  ;;  %v1326_v43 = vcombine.low %v1178_v17, %v1179_v58  ;;  %v1327_v54 = vcombine.low %v1180_v2, %v1181_v19  ;;  %v1302_v0 = vrot.slane %v1288_v11, %v2034_v15 }
 0x123   : > { %v869_v63 = vrot.slane %v2475_v25, %v2034_v15  ;;  %v1270_v59 = vrot.slane %v1172_v14, %v2034_v15  ;;  %v1271_v7 = vcombine.low %v1256_v13, %v1263_v27  ;;  %v1295_v9 = vrot.slane %v1287_v4, %v2034_v15 }
 0x124   : > { %v923_v20 = vrot.slane %v908_v48, %v2034_v15  ;;  %v1334_v44 = vrot.slane %v1326_v43, %v2034_v15  ;;  %v1341_v58 = vrot.slane %v1327_v54, %v2034_v15  ;;  %v2476_v41 = vcombine.high %v2062_v51, %v2062_v51 }
 0x125   : > { %v884_v24 = vrot.slane %v869_v63, %v2034_v15  ;;  %v1278_v32 = vrot.slane %v1271_v7, %v2034_v15  ;;  %v1285_v19 = vrot.slane %v1270_v59, %v2034_v15  ;;  %v1443_v12 = vcombine.low %v2163_v30, %v2165_v31 }
 0x126   : > { %v1025_v61 = vrot.slane %v2476_v41, %v2034_v15  ;;  %v1182_v13 = vmul.f32 %v923_v20, %v544_v3  ;;  %v1349_v62 = vcombine.low %v1334_v44, %v1341_v58  ;;  %v1310_v10 = vcombine.low %v1295_v9, %v1302_v0 }
 0x127   : > { %v1177_v16 = vmul.f32 %v884_v24, %v535_v39  ;;  %v1286_v60 = vcombine.low %v1278_v32, %v1285_v19  ;;  %v1444_v51 = vcombine.low %v2177_v49, %v2171_v34  ;;  %v1451_v11 = vrot.slane %v1443_v12, %v2034_v15 }
 0x128   : > { %v1040_v17 = vrot.slane %v1025_v61, %v2034_v15  ;;  %v1348_v2 = vrot.slane %v1182_v13, %v2034_v15  ;;  %v1356_v14 = vrot.slane %v1349_v62, %v2034_v15  ;;  %v1317_v27 = vrot.slane %v1310_v10, %v2034_v15 }
 0x129   : > { %v1309_v3 = vrot.slane %v1177_v16, %v2034_v15  ;;  %v1569_v31 = vsel %vm1568_vm2, %v1286_v60, 0.0  ;;  %v1458_v28 = vrot.slane %v1444_v51, %v2034_v15  ;;  %v1010_v48 = vcombine.high %v2115_v26, %v2115_v26 }
 0x12a   : > { %v1197_v30 = vmul.f32 %v1040_v17, %v2169_v37  ;;  %v1363_v39 = vrot.slane %v1348_v2, %v2034_v15  ;;  %v546_v34 = vcombine.high %v2282_v1, %v2282_v1  ;;  %1570 = vadd.xlane.f32.xlu0 %v1569_v31  ;;  %v1404_v54 = vcombine.low %v2126_v35, %v2139_v45 }
 0x12b   : > { %v1324_v49 = vrot.slane %v1309_v3, %v2034_v15  ;;  %v1466_v63 = vcombine.low %v1451_v11, %v1458_v28  ;;  %v2477_v4 = vcombine.high %v2124_v33, %v2124_v33  ;;  %v2478_v26 = vcombine.high %v2060_v50, %v2060_v50 }
 0x12c   : > { %v1465_v43 = vrot.slane %v1197_v30, %v2034_v15  ;;  %v1364_v25 = vcombine.low %v1356_v14, %v1363_v39  ;;  %v1412_v20 = vrot.slane %v1404_v54, %v2034_v15  ;;  %v1426_v44 = vrot.slane %v2159_v21, %v2034_v15 }
 0x12d   : > { %v1191_v0 = vmul.f32 %v1010_v48, %v2477_v4  ;;  %v947_v59 = vrot.slane %v2478_v26, %v2034_v15  ;;  %v1325_v1 = vcombine.low %v1317_v27, %v1324_v49  ;;  %v1473_v45 = vrot.slane %v1466_v63, %v2034_v15 }
 0x12e   : > { %v1480_v7 = vrot.slane %v1465_v43, %v2034_v15  ;;  %v1575_v35 = vsel %vm1568_vm2, %v1364_v25, 0.0  ;;  %v1183_v24 = vmul.f32 %v2111_v23, %v546_v34  ;;  %v1366_v9 = vcombine.low %v2133_v42, %v2144_v53 }
 0x12f   : > { %v1405_v33 = vcombine.low %v2141_v46, %v1191_v0  ;;  %v962_v58 = vrot.slane %v947_v59, %v2034_v15  ;;  %1576 = vadd.xlane.f32.xlu1 %v1575_v35  ;;  %v1572_v50 = vsel %vm1568_vm2, %v1325_v1, 0.0  ;;  %v2479_v21 = vcombine.high %v2064_v52, %v2064_v52  ;;  %v2485_v35 = vld [vmem:[#allocation5_spill] sm:$0xff] }
 0x130   : > { %1573 = vadd.xlane.f32.xlu0 %v1572_v50  ;;  %v1481_v61 = vcombine.low %v1473_v45, %v1480_v7  ;;  %v2480_v46 = vcombine.high %v2118_v29, %v2118_v29  ;;  %v2481_v13 = vcombine.high %v2169_v37, %v2169_v37  ;;  %v1441_v42 = vrot.slane %v1426_v44, %v2034_v15 }
 0x131   : > { %v1064_v41 = vrot.slane %v2479_v21, %v2034_v15  ;;  %v1419_v32 = vrot.slane %v1405_v33, %v2034_v15  ;;  %v1365_v53 = vcombine.low %v1183_v24, %v2130_v40  ;;  %v2482_v12 = vcombine.low %v2248_v5, %v2254_v38 }
 0x132   : > { %v1187_v19 = vmul.f32 %v962_v58, %v2480_v46  ;;  %v1199_v23 = vmul.f32 %v2227_v6, %v2481_v13  ;;  %v1584_v16 = vsel %vm1568_vm2, %v1481_v61, 0.0  ;;  %v1380_v17 = vrot.slane %v1366_v9, %v2034_v15 }
 0x133   : > { %v1079_v52 = vrot.slane %v1064_v41, %v2034_v15  ;;  %v1497_v62 = vrot.slane %v2482_v12, %v2034_v15  ;;  %v1427_v29 = vcombine.low %v1412_v20, %v1419_v32  ;;  %1585 = vadd.xlane.f32.xlu1 %v1584_v16  ;;  %v1373_v6 = vrot.slane %v1365_v53, %v2034_v15 }
 0x134   : > { %v1387_v10 = vrot.slane %v1187_v19, %v2034_v15  ;;  %v1482_v37 = vcombine.low %v2174_v36, %v1199_v23  ;;  %v2483_v40 = vcombine.high %v2237_v55, %v2237_v55  ;;  %v1089_v38 = vcombine.high %v2075_v57, %v2075_v57 }
 0x135   : > { %v1434_v5 = vrot.slane %v1427_v29, %v2034_v15  ;;  %v693_v51 = vcombine.high %v2252_v56, %v2252_v56  ;;  %v1521_v36 = vcombine.low %v2259_v22, %v2256_v47  ;;  %v1388_v11 = vcombine.low %v1373_v6, %v1380_v17 }
 0x136   : > { %v1202_v60 = vmul.f32 %v1079_v52, %v2483_v40  ;;  %v1490_v2 = vrot.slane %v1482_v37, %v2034_v15  ;;  %v1103_v3 = vrot.slane %v1089_v38, %v2034_v15  ;;  %v1522_v55 = vcombine.low %v2262_v8, %v2267_v18 }
 0x137   : > { %v1442_v27 = vcombine.low %v1434_v5, %v1441_v42  ;;  %v1402_v57 = vrot.slane %v1387_v10, %v2034_v15  ;;  %v1395_v31 = vrot.slane %v1388_v11, %v2034_v15  ;;  %v1529_v56 = vrot.slane %v1521_v36, %v2034_v15 }
 0x138   : > { %v1504_v14 = vrot.slane %v1202_v60, %v2034_v15  ;;  %v1505_v30 = vcombine.low %v1490_v2, %v1497_v62  ;;  %v1118_v39 = vrot.slane %v1103_v3, %v2034_v15  ;;  %v1536_v47 = vrot.slane %v1522_v55, %v2034_v15 }
 0x139   : > { %v1581_v22 = vsel %vm1568_vm2, %v1442_v27, 0.0  ;;  %v1403_v18 = vcombine.low %v1395_v31, %v1402_v57  ;;  %v2484_v7 = vlaneseq }
 0x13a   : > { %v1512_v28 = vrot.slane %v1505_v30, %v2034_v15  ;;  %v1519_v48 = vrot.slane %v1504_v14, %v2034_v15  ;;  %1582 = vadd.xlane.f32.xlu0 %v1581_v22  ;;  %v1207_v8 = vmul.f32 %v1118_v39, %v693_v51  ;;  %v1544_v34 = vcombine.low %v1529_v56, %v1536_v47 }
 0x13b   : > { %v1578_v43 = vsel %vm1568_vm2, %v1403_v18, 0.0  ;;  %v1602_v20 = vand.u32 127, %v2484_v7 }
 0x13c   : > { %v1520_v49 = vcombine.low %v1512_v28, %v1519_v48  ;;  %v1543_v54 = vrot.slane %v1207_v8, %v2034_v15  ;;  %v1551_v25 = vrot.slane %v1544_v34, %v2034_v15  ;;  %1579 = vadd.xlane.f32.xlu1 %v1578_v43 }
 0x13d   : > { %v1605_v45 = vsub.s32 %v1602_v20, %v2485_v35 }
 0x13e   : > { %v1587_v63 = vsel %vm1568_vm2, %v1520_v49, 0.0  ;;  %v1558_v4 = vrot.slane %v1543_v54, %v2034_v15 }
 0x13f   : > { %1588 = vadd.xlane.f32.xlu0 %v1587_v63 }
 0x140   : > { %v1559_v0 = vcombine.low %v1551_v25, %v1558_v4 }
 0x142   : > { %v1590_v26 = vsel %vm1568_vm2, %v1559_v0, 0.0 }
 0x143   : > { %1591 = vadd.xlane.f32.xlu1 %v1590_v26 }
 0x1b7   : > { %v1571_v59 = vpop.xlane.xlu0 %1570 }
 0x1b8   : > { %v1606_v50 = vrot.slane %v1571_v59, %v1605_v45 }
 0x1bc   : > { %v1577_v1 = vpop.xlane.xlu1 %1576 }
 0x1bd   : > { %v1574_v44 = vpop.xlane.xlu0 %1573  ;;  %v1614_v15 = vrot.slane %v1577_v1, %v1605_v45 }
 0x1be   : > { %v1610_v58 = vrot.slane %v1574_v44, %v1605_v45 }
 0x1c0   : > { %v1586_v33 = vpop.xlane.xlu1 %1585  ;;  %v1636_v9 = vsel %vm1635_vm3, %v1610_v58, %v1606_v50 }
 0x1c1   : > { %v1638_v46 = vsel %vm1637_vm4, %v1614_v15, %v1636_v9  ;;  %v1626_v13 = vrot.slane %v1586_v33, %v1605_v45 }
 0x1c7   : > { %v1583_v24 = vpop.xlane.xlu0 %1582 }
 0x1c8   : > { %v1622_v32 = vrot.slane %v1583_v24, %v1605_v45 }
 0x1c9   : > { %v1580_v21 = vpop.xlane.xlu1 %1579 }
 0x1ca   : > { %v1618_v41 = vrot.slane %v1580_v21, %v1605_v45 }
 0x1cc   : > { %v1589_v61 = vpop.xlane.xlu0 %1588  ;;  %v1640_v23 = vsel %vm1639_vm5, %v1618_v41, %v1638_v46 }
 0x1cd   : > { %v1630_v19 = vrot.slane %v1589_v61, %v1605_v45  ;;  %v1642_v42 = vsel %vm1641_vm6, %v1622_v32, %v1640_v23 }
 0x1ce   : > { %v1644_v53 = vsel %vm1643_vm7, %v1626_v13, %v1642_v42 }
 0x1cf   : > { %v1646_v52 = vsel %vm1645_vm8, %v1630_v19, %v1644_v53 }
 0x1d0   : > { %v1592_v12 = vpop.xlane.xlu1 %1591 }
 0x1d1   : > { %v1634_v62 = vrot.slane %v1592_v12, %v1605_v45 }
 0x1d3   : > { %v1648_v16 = vsel %vm1647_vm9, %v1634_v62, %v1646_v52 }
 0x1d4   : > { %v1651_v29 = vsel %vm1650_vm10, %v1648_v16, 0.0 }
 0x1d5   : > { %1652 = vst [vmem:[%s258_s19] sm:$0xff] %v1651_v29 }
 0x1d6   : > { %1860 = shalt.err (!%p1857_p4)
}
 0x1d7   : > { %s1861_s13 = scalar_lea.hbm %s2418_s29, 128  ;;  %s1865_s16 = scalar_lea.hbm %s2468_s6, 256 }
 0x1d8   : > { %p1862_p7 = scmp.ne.s32.totalorder %s2418_s29, %s1861_s13  ;;  %p1866_p10 = scmp.lt.u32.totalorder %s2418_s29, %s2468_s6 }
 0x1d9   : > { %p1867_p11 = scmp.lt.u32.totalorder %s1865_s16, %s1861_s13  ;;  %p1869_p13 = scmp.lt.u32.totalorder %s1861_s13, %s2418_s29 }
 0x1da   : > { %p1863_p8 = pnand %p1862_p7, %p1988_p5 }
 0x1db   : > { %p1868_p12 = por %p1867_p11, %p1866_p10 }
 0x1dc   : > { %p1864_p9 = pneg %p1863_p8 }
 0x1dd   : > { %p1870_p0 = por %p1869_p13, %p1868_p12 }
 0x1df   : > { %p1871_p1 = pnand %p1870_p0, %p1864_p9 }
 0x1e1   : > { %1874 = shalt.err (!%p1871_p1)
}
 0x1e2   : > { %1798 = dma.vmem_to_hbm [thread:$0]  (%p1988_p5), %s2420_s20, 128, %s2418_s29, %s1654_s9  }
 0x1e3 PF: > { %p1804_p2 = scmp.ge.s32.totalorder %s1909_s24, 2  ;;  %s1679_s19 = sand.u32 1, %s1897_s21  }
 0x1e4   : > { %s1680_s26 = scalar_lea.sflag [#allocation3], %s1679_s19 }
 0x1e5   : > { %p1801_p3 = pnand %p1804_p2, %p1992_p6 }
 0x1e7   : > { %1892 = dma.done.wait (!%p1801_p3), %s1680_s26, 128  }
 0x1e8   : > { %1894 = vsyncadd (!%p1801_p3), %s1680_s26, 4294967168  ;;  %p16_p4 = scmp.ge.s32.totalorder %s1975_s27, 4   ;;  %s2486_s21 = smov %s1901_s22 }
 0x1e9   : > { %s2487_s22 = smov %s1905_s23  ;;  %s2488_s23 = smov %s1986_s30 }
 0x1ea   : > { %s2489_s24 = smov %s1975_s27  ;;  %18 = sbr.rel (!%p16_p4) target bundleno = 3 (0x3), region = 82 }
 0x1f1   :  { %1685 = vsyncpa [#allocation3], 1 }
 0x1f2   :  { %1687 = vsyncpa [#allocation3 + $0x1], 1 }

// kernel: tpu_custom_call.1
= control target key start
LH: loop header
LB: loop body
LE: loop exit
PB: predicated region body
PF: predicated region fallthrough
CT: control target
= control target key end

     0   :  { %11 = vsyncpa [#allocation3], 0  ;;  %s2462_s0 = inlined_call_operand.vmem [shape: bf16[16,32], index: 0, kind: input, shape index: {}]   ;;  %s2463_s1 = inlined_call_operand.vmem [shape: bf16[80,32], index: 1, kind: input, shape index: {}]   ;;  %s2464_s2 = inlined_call_operand.vmem [shape: bf16[32,128], index: 2, kind: input, shape index: {}]   ;;  %s2465_s3 = inlined_call_operand.vmem [shape: f32[1,128], index: 3, kind: input, shape index: {}]   ;;  %s2466_s4 = inlined_call_operand.vmem [shape: bf16[32,128], index: 4, kind: input, shape index: {}]   ;;  %s2467_s5 = inlined_call_operand.vmem [shape: f32[1,128], index: 5, kind: input, shape index: {}]   ;;  %s2468_s6 = inlined_call_operand.hbm [shape: f32[16,128], index: 6, kind: output, shape index: {}]  }
   0x1   :  { %13 = vsyncpa [#allocation3 + $0x1], 0  ;;  %s1950_s21 = smov 0   ;;  %s1952_s22 = smov 0  }
   0x2   :  { %s1954_s23 = smov 0   ;;  %s1956_s24 = smov 0  }
   0x3 LB: > { %s1971_s25 = sadd.s32 4294967295, %s1909_s24   ;;  %s1738_s26 = sadd.s32 4294967294, %s1909_s24   ;;  %s1909_s24 = sphi %s1956_s24, %s2489_s24   ;;  %s1905_s23 = sphi %s1954_s23, %s2488_s23   ;;  %s1901_s22 = sphi %s1952_s22, %s2487_s22   ;;  %s1897_s21 = sphi %s1950_s21, %s2486_s21  }
   0x4   : > { %s1975_s27 = sadd.s32 1, %s1909_s24   ;;  %s162_s28 = sadd.s32 1, %s1905_s23 }
   0x5   : > { %s159_s29 = ssub.s32 %s1909_s24, %s1975_s27  ;;  %p172_p0 = scmp.ne.s32.totalorder %s1905_s23, %s1901_s22 }
   0x6   : > { %p160_p1 = scmp.eq.s32.totalorder %s159_s29, 0  ;;  %p173_p2 = scmp.eq.s32.totalorder %s1971_s25, 1 }
   0x7   : > { %p178_p3 = scmp.ne.s32.totalorder %s1901_s22, %s1897_s21  ;;  %p179_p4 = scmp.eq.s32.totalorder %s1738_s26, 1 }
   0x8   : > { %s1986_s30 = scalar_select %p160_p1, %s1905_s23, %s162_s28  }
   0x9   : > { %p1988_p5 = por %p173_p2, %p172_p0  ;;  %p1992_p6 = por %p179_p4, %p178_p3 }
   0xa   : > { %p1741_p7 = scmp.ge.s32.totalorder %s1909_s24, 1  ;;  %p225_p8 = scmp.lt.s32.totalorder %s1909_s24, 3 }
   0xc   : > { %p226_p9 = pnand %p1741_p7, %p225_p8 }
   0xe   : > { %229 = sbr.rel (%p226_p9) target bundleno = 483 (0x1e3), region = 44 }
  0x15   : > { %v1840_v0 = vld [vmem:[%s2464_s2] sm:$0xff]   ;;  %v1911_v1 = vmov 0.0   ;;  %v1842_v3 = vld [vmem:[%s2464_s2 + $0x8] sm:$0xff]   ;;  %vm1912_vm0 = vmmov 0   ;;  %p259_p10 = scmp.lt.s32.totalorder %s1971_s25, 1  ;;  %s263_s18 = smul.u32 5, %s1971_s25  ;;  %v2469_v11 = vlaneseq }
  0x16   : > { %1770 = vmatprep.subr.bf16.mxu0 %v1911_v1  ;;  %1794 = vmatprep.subr.bf16.mxu1 %v1911_v1  ;;  %v1841_v2 = vld [vmem:[%s2466_s4] sm:$0xff]   ;;  %v1843_v4 = vld [vmem:[%s2466_s4 + $0x8] sm:$0xff]   ;;  %vm294_vm1 = vcmask 261120   ;;  %v1913_v9 = vmov 1966171168   ;;  %vm1568_vm2 = vcmask 1044480  }
  0x17   : > { %1771 = vmatpush3.bf16.msra.mxu0 %v1840_v0  ;;  %1774 = vmatprep.mubr.msk.bf16.mxu0 %vm1912_vm0, %v1911_v1  ;;  %s260_s17 = scalar_select %p259_p10, %s1971_s25, 1  ;;  %v451_v10 = vunpack.c.l.s4 %v1913_v9  ;;  %v2028_v13 = vshrl.u32 %v2469_v11, 7  ;;  %v1745_v14 = vld [vmem:[%s2465_s3] ss:$0 sm:$0xff]  ;;  %vm1635_vm3 = vcmask 1041409   ;;  %vm1637_vm4 = vcmask 1042434  }
  0x18   : > { %1796 = vmatpush3.bf16.msra.mxu1 %v1841_v2  ;;  %1772 = vmatprep.subr.bf16.mxu0 %v1911_v1  ;;  %p264_p11 = scmp.lt.s32.totalorder %s263_s18, 9  ;;  %v2043_v27 = vld [vmem:[%s2467_s5] ss:$0 sm:$0xff]  ;;  %s256_s16 = sand.u32 1, %s1901_s22   ;;  %vm1639_vm5 = vcmask 1043459   ;;  %vm1641_vm6 = vcmask 1044484  }
  0x19   : > { %1795 = vmatprep.subr.bf16.mxu1 %v1911_v1  ;;  %1786 = vmatprep.mubr.msk.bf16.mxu1 %vm1912_vm0, %v1911_v1  ;;  %s1743_s19 = sshll.u32 %s260_s17, 2  ;;  %v452_v12 = vunpack.c.0.s8 %v451_v10  ;;  %2473 = vst [vmem:[#allocation5_spill] sm:$0xff] %v2028_v13  ;;  %v786_v23 = vsub.s32 0, %v2028_v13  ;;  %s1742_s17 = sshll.u32 %s256_s16, 3  ;;  %vm1643_vm7 = vcmask 1045509   ;;  %vm1645_vm8 = vcmask 1046534  }
  0x1a   : > { %s262_s28 = scalar_lea.vmem %s2462_s0, %s1743_s19  ;;  %s2491_s18 = smov (!%p264_p11, %s263_s18), 9  ;;  %vm1647_vm9 = vcmask 1047559   ;;  %vm1650_vm10 = vcmask 39936  }
  0x1b   : > { %1773 = vmatpush3.bf16.msra.mxu0 %v1842_v3  ;;  %v270_v5 = vld [vmem:[%s262_s28] sm:$0xf]  ;;  %s1744_s29 = sshll.u32 %s2491_s18, 2  ;;  %v2034_v15 = vsub.s32 %v452_v12, %v2028_v13  ;;  %s1759_s18 = sshll.u32 %s1971_s25, 7 }
  0x1c   : > { %1797 = vmatpush3.bf16.msra.mxu1 %v1843_v4  ;;  %1778 = vmatprep.subr.bf16.mxu0 %v1911_v1  ;;  %s267_s11 = scalar_lea.vmem %s2463_s1, %s1744_s29  ;;  %s258_s19 = scalar_lea.vmem [#allocation2], %s1742_s17 }
  0x1d   : > { %v1844_v6 = vld [vmem:[%s267_s11 + $0x8] sm:$0xff]   ;;  %v1845_v7 = vld [vmem:[%s267_s11] sm:$0xff]   ;;  %v1846_v8 = vld [vmem:[%s267_s11 + $0x10] ss:$0 sps:$4 sm:$0xff]   ;;  %s1667_s20 = sshll.u32 %s258_s19, 4  ;;  %s2418_s29 = scalar_lea.hbm %s2468_s6, %s1759_s18  ;;  %s2420_s20 = int_to_ptr.vmem [resolvable:$true] %s1667_s20 }
  0x1e   : > { %1775 = vmatmul.mubr.msk.bf16.vlgmr.msra.gmra.mrb[0].mxu0 %vm294_vm1, %v270_v5  ;;  %s1654_s9 = scalar_lea.sflag [#allocation3], %s256_s16  ;;  %s1847_s25 = scalar_lea.vmem %s2420_s20, 128 }
  0x1f   : > { %1779 = vmatpush3.bf16.msra.mxu0 %v1841_v2  ;;  %1782 = vmatprep.mubr.msk.bf16.mxu0 %vm1912_vm0, %v1911_v1  ;;  %p1848_p12 = scmp.ne.s32.totalorder %s2420_s20, %s1847_s25  ;;  %s1914_s10 = smov [#allocation2]  }
  0x20   : > { %1780 = vmatprep.subr.bf16.mxu0 %v1911_v1  ;;  %1787 = vmatmul.mubr.msk.bf16.vlgmr.msra.gmra.mrb[0].mxu1 %vm294_vm1, %v1844_v6  ;;  %s1851_s11 = sshll.u32 %s1914_s10, 4  ;;  %s1852_s11 = int_to_ptr.vmem [resolvable:$false] %s1851_s11 }
  0x21   : > { %1790 = vmatprep.mubr.msk.bf16.mxu1 %vm1912_vm0, %v1911_v1  ;;  %p1849_p13 = pnand %p1848_p12, %p1988_p5  ;;  %s1853_s12 = scalar_lea.vmem %s1852_s11, 256 }
  0x22   : > { %p1854_p1 = scmp.lt.s32.totalorder %s2420_s20, %s1852_s11  ;;  %p1855_p2 = scmp.lt.s32.totalorder %s1853_s12, %s1847_s25 }
  0x23   : > { %1781 = vmatpush3.bf16.msra.mxu0 %v1843_v4  ;;  %p1850_p0 = pneg %p1849_p13 }
  0x24   : > { %p1856_p3 = por %p1855_p2, %p1854_p1 }
  0x26   : > { %1783 = vmatmul.mubr.msk.bf16.vlgmr.msra.gmra.mrb[4].mxu0 %vm294_vm1, %v1845_v7  ;;  %p1857_p4 = pnand %p1856_p3, %p1850_p0 }
  0x28   : > { %1791 = vmatmul.mubr.msk.bf16.gmra.mrb[4].mxu1 %vm294_vm1, %v1846_v8 }
  0xf1   : > { %v332_v16 = vpop.f32.mrb[0].mxu0 }
  0xf2   : > { %v333_v17 = vadd.f32 %v1745_v14, %v332_v16  ;;  %v1776_v18 = vpop.f32.mrb[1].mxu0 }
  0xf3   : > { %v335_v19 = vpop.f32.mrb[2].mxu0  ;;  %v430_v28 = vpop.f32.mrb[0].mxu1 }
  0xf4   : > { %v735_v20 = vcombine.high %v333_v17, %v333_v17  ;;  %v742_v21 = vrot.slane %v333_v17, %v2034_v15  ;;  %v1777_v22 = vpop.f32.mrb[3].mxu0  ;;  %v1788_v33 = vpop.f32.mrb[1].mxu1  ;;  %v431_v35 = vadd.f32 %v2043_v27, %v430_v28 }
  0xf5   : > { %v433_v36 = vpop.f32.mrb[2].mxu1 }
  0xf6   : > { %v749_v24 = vrot.slane %v735_v20, %v2034_v15  ;;  %v750_v25 = vcombine.high %v742_v21, %v742_v21  ;;  %v758_v26 = vrot.slane %v742_v21, %v2034_v15  ;;  %v1789_v42 = vpop.f32.mrb[3].mxu1  ;;  %v547_v5 = vcombine.high %v431_v35, %v431_v35 }
  0xf7   : > { %v554_v8 = vrot.slane %v431_v35, %v2034_v15  ;;  %v434_v16 = vadd.f32 %v2043_v27, %v433_v36 }
  0xf8   : > { %v751_v29 = vcombine.high %v749_v24, %v749_v24  ;;  %v765_v30 = vrot.slane %v749_v24, %v2034_v15  ;;  %v772_v31 = vrot.slane %v750_v25, %v2034_v15  ;;  %v780_v32 = vcombine.high %v758_v26, %v758_v26 }
  0xf9   : > { %v787_v34 = vrot.slane %v758_v26, %v786_v23  ;;  %v2048_v37 = vpop.f32.mrb[4].mxu0  ;;  %v561_v14 = vrot.slane %v547_v5, %v2034_v15  ;;  %v562_v20 = vcombine.high %v554_v8, %v554_v8  ;;  %v570_v21 = vrot.slane %v554_v8, %v2034_v15 }
  0xfa   : > { %v779_v38 = vrot.slane %v751_v29, %v2034_v15  ;;  %v781_v39 = vcombine.high %v765_v30, %v765_v30  ;;  %v782_v40 = vcombine.high %v772_v31, %v772_v31  ;;  %v2051_v41 = vrot.slane %v772_v31, %v786_v23  ;;  %v1784_v43 = vpop.f32.mrb[5].mxu0 }
  0xfb   : > { %v2053_v44 = vrot.slane %v780_v32, %v786_v23  ;;  %v803_v45 = vrot.slane %v765_v30, %v786_v23  ;;  %v816_v46 = vcombine.high %v787_v34, %v787_v34  ;;  %v2056_v47 = vrot.slane %v787_v34, %v2034_v15  ;;  %v2058_v48 = vpop.f32.mrb[6].mxu0  ;;  %v2090_v1 = vpop.f32.mrb[4].mxu1 }
  0xfc   : > { %v783_v49 = vcombine.high %v779_v38, %v779_v38  ;;  %v2060_v50 = vrot.slane %v782_v40, %v786_v23  ;;  %v2062_v51 = vrot.slane %v779_v38, %v786_v23  ;;  %v2064_v52 = vrot.slane %v781_v39, %v786_v23  ;;  %v1785_v53 = vpop.f32.mrb[7].mxu0  ;;  %v1792_v6 = vpop.f32.mrb[5].mxu1 }
  0xfd   : > { %v2067_v54 = vrot.slane %v816_v46, %v2034_v15  ;;  %v831_v55 = vcombine.high %v2056_v47, %v2056_v47  ;;  %v2073_v56 = vrot.slane %v2051_v41, %v2034_v15  ;;  %v2083_v60 = vrot.slane %v2053_v44, %v2034_v15  ;;  %v441_v12 = vpop.f32.mrb[6].mxu1 }
  0xfe   : > { %v2075_v57 = vrot.slane %v783_v49, %v786_v23  ;;  %v972_v63 = vcombine.high %v803_v45, %v803_v45  ;;  %v979_v0 = vrot.slane %v803_v45, %v2034_v15  ;;  %v2098_v4 = vrot.slane %v2064_v52, %v2034_v15  ;;  %v1793_v19 = vpop.f32.mrb[7].mxu1 }
  0xff   : > { %v870_v61 = vcombine.high %v2073_v56, %v2073_v56  ;;  %v909_v2 = vcombine.high %v2083_v60, %v2083_v60  ;;  %v940_v9 = vrot.slane %v2060_v50, %v2034_v15  ;;  %v1018_v18 = vrot.slane %v2062_v51, %v2034_v15 }
 0x100   : > { %v987_v7 = vcombine.high %v979_v0, %v979_v0  ;;  %v994_v10 = vrot.slane %v979_v0, %v2034_v15  ;;  %v986_v17 = vrot.slane %v972_v63, %v2034_v15  ;;  %v563_v24 = vcombine.high %v561_v14, %v561_v14 }
 0x101   : > { %v948_v22 = vcombine.high %v940_v9, %v940_v9  ;;  %v2111_v23 = vrot.slane %v940_v9, %v2034_v15  ;;  %v577_v25 = vrot.slane %v561_v14, %v2034_v15  ;;  %v2118_v29 = vrot.slane %v562_v20, %v2034_v15 }
 0x102   : > { %v2115_v26 = vrot.slane %v987_v7, %v2034_v15  ;;  %v1009_v28 = vcombine.high %v994_v10, %v994_v10  ;;  %v592_v30 = vcombine.high %v570_v21, %v570_v21  ;;  %v2124_v33 = vrot.slane %v563_v24, %v2034_v15 }
 0x103   : > { %v969_v31 = vrot.slane %v948_v22, %v2034_v15  ;;  %v970_v32 = vcombine.high %v2111_v23, %v2111_v23  ;;  %v593_v34 = vcombine.high %v577_v25, %v577_v25  ;;  %v2126_v35 = vmul.f32 %v994_v10, %v577_v25 }
 0x104   : > { %v596_v36 = vcombine.high %v434_v16, %v434_v16  ;;  %v2139_v45 = vmul.f32 %v2115_v26, %v2124_v33  ;;  %v603_v49 = vrot.slane %v434_v16, %v2034_v15  ;;  %v1001_v0 = vrot.slane %v986_v17, %v2034_v15 }
 0x105   : > { %v971_v39 = vcombine.high %v969_v31, %v969_v31  ;;  %v2130_v40 = vmul.f32 %v969_v31, %v570_v21  ;;  %v2133_v42 = vmul.f32 %v970_v32, %v2118_v29  ;;  %v2141_v46 = vmul.f32 %v1009_v28, %v593_v34 }
 0x106   : > { %v610_v63 = vrot.slane %v596_v36, %v2034_v15  ;;  %v1026_v5 = vcombine.high %v1018_v18, %v1018_v18  ;;  %v611_v6 = vcombine.high %v603_v49, %v603_v49  ;;  %v619_v7 = vrot.slane %v603_v49, %v2034_v15 }
 0x107   : > { %v2144_v53 = vmul.f32 %v971_v39, %v592_v30  ;;  %v1033_v8 = vrot.slane %v1018_v18, %v2034_v15  ;;  %v2152_v9 = vrot.slane %v2098_v4, %v2034_v15  ;;  %v423_v16 = vadd.f32 %v2043_v27, %v2048_v37 }
 0x108   : > { %v612_v10 = vcombine.high %v610_v63, %v610_v63  ;;  %v626_v12 = vrot.slane %v610_v63, %v2034_v15  ;;  %v1047_v14 = vrot.slane %v1026_v5, %v2034_v15  ;;  %v633_v17 = vrot.slane %v611_v6, %v2034_v15 }
 0x109   : > { %v641_v19 = vcombine.high %v619_v7, %v619_v7  ;;  %v1048_v20 = vcombine.high %v1033_v8, %v1033_v8  ;;  %v2159_v21 = vmul.f32 %v1001_v0, %v619_v7  ;;  %v449_v25 = vcombine.high %v423_v16, %v423_v16 }
 0x10a   : > { %v642_v22 = vcombine.high %v626_v12, %v626_v12  ;;  %v1049_v24 = vcombine.high %v1047_v14, %v1047_v14  ;;  %v643_v28 = vcombine.high %v633_v17, %v633_v17  ;;  %v2163_v30 = vmul.f32 %v1033_v8, %v633_v17 }
 0x10b   : > { %v2165_v31 = vmul.f32 %v1047_v14, %v641_v19  ;;  %v456_v32 = vrot.slane %v423_v16, %v2034_v15  ;;  %v2169_v37 = vrot.slane %v612_v10, %v2034_v15  ;;  %v463_v39 = vrot.slane %v449_v25, %v2034_v15 }
 0x10c   : > { %v2171_v34 = vmul.f32 %v1049_v24, %v626_v12  ;;  %v2174_v36 = vmul.f32 %v2152_v9, %v642_v22  ;;  %v2177_v49 = vmul.f32 %v1048_v20, %v643_v28  ;;  %v838_v5 = vrot.slane %v2056_v47, %v2034_v15 }
 0x10d   : > { %v464_v63 = vcombine.high %v456_v32, %v456_v32  ;;  %v472_v0 = vrot.slane %v456_v32, %v2034_v15  ;;  %v465_v6 = vcombine.high %v463_v39, %v463_v39  ;;  %v2183_v7 = vrot.slane %v463_v39, %v2034_v15 }
 0x10e   : > { %v852_v8 = vrot.slane %v831_v55, %v2034_v15  ;;  %v2191_v10 = vrot.slane %v2073_v56, %v2034_v15  ;;  %v853_v16 = vcombine.high %v838_v5, %v838_v5  ;;  %v2198_v17 = vrot.slane %v870_v61, %v2034_v15 }
 0x10f   : > { %v486_v12 = vrot.slane %v464_v63, %v2034_v15  ;;  %v494_v14 = vcombine.high %v472_v0, %v472_v0  ;;  %v493_v19 = vrot.slane %v465_v6, %v2034_v15  ;;  %v495_v47 = vcombine.high %v2183_v7, %v2183_v7 }
 0x110   : > { %v854_v55 = vcombine.high %v852_v8, %v852_v8  ;;  %v2203_v20 = vmul.f32 %v838_v5, %v472_v0  ;;  %v439_v28 = vadd.f32 %v2043_v27, %v2090_v1  ;;  %v1065_v39 = vcombine.high %v2098_v4, %v2098_v4 }
 0x111   : > { %v496_v22 = vcombine.high %v486_v12, %v486_v12  ;;  %v2205_v24 = vmul.f32 %v852_v8, %v486_v12  ;;  %v2207_v25 = vmul.f32 %v853_v16, %v494_v14  ;;  %v2214_v61 = vmul.f32 %v2191_v10, %v493_v19 }
 0x112   : > { %v2217_v32 = vmul.f32 %v2198_v17, %v495_v47  ;;  %v645_v5 = vcombine.high %v439_v28, %v439_v28  ;;  %v652_v1 = vrot.slane %v439_v28, %v2034_v15  ;;  %v2227_v6 = vrot.slane %v1065_v39, %v2034_v15 }
 0x113   : > { %v2221_v63 = vmul.f32 %v854_v55, %v496_v22  ;;  %v1248_v0 = vcombine.low %v2203_v20, %v2205_v24  ;;  %v1087_v8 = vcombine.high %v2152_v9, %v2152_v9  ;;  %v1096_v12 = vrot.slane %v2075_v57, %v2034_v15 }
 0x114   : > { %v426_v4 = vadd.f32 %v2043_v27, %v2058_v48  ;;  %v497_v14 = vcombine.high %v493_v19, %v493_v19  ;;  %v659_v16 = vrot.slane %v645_v5, %v2034_v15  ;;  %v660_v47 = vcombine.high %v652_v1, %v652_v1 }
 0x115   : > { %v2237_v55 = vrot.slane %v652_v1, %v2034_v15  ;;  %v1088_v20 = vcombine.high %v2227_v6, %v2227_v6  ;;  %v1104_v22 = vcombine.high %v1096_v12, %v1096_v12  ;;  %v1111_v24 = vrot.slane %v1096_v12, %v2034_v15 }
 0x116   : > { %v498_v9 = vcombine.high %v426_v4, %v426_v4  ;;  %v661_v28 = vcombine.high %v659_v16, %v659_v16  ;;  %v675_v39 = vrot.slane %v659_v16, %v2034_v15  ;;  %v682_v11 = vrot.slane %v660_v47, %v2034_v15 }
 0x117   : > { %v892_v27 = vcombine.high %v2191_v10, %v2191_v10  ;;  %v1125_v48 = vrot.slane %v1104_v22, %v2034_v15  ;;  %v1126_v19 = vcombine.high %v1111_v24, %v1111_v24  ;;  %v2248_v5 = vmul.f32 %v1087_v8, %v2237_v55 }
 0x118   : > { %v505_v1 = vrot.slane %v426_v4, %v2034_v15  ;;  %v2252_v56 = vrot.slane %v661_v28, %v2034_v15  ;;  %v691_v12 = vcombine.high %v675_v39, %v675_v39  ;;  %v692_v43 = vcombine.high %v682_v11, %v682_v11 }
 0x119   : > { %v2254_v38 = vmul.f32 %v1088_v20, %v682_v11  ;;  %v1127_v16 = vcombine.high %v1125_v48, %v1125_v48  ;;  %v2256_v47 = vmul.f32 %v1125_v48, %v675_v39  ;;  %v512_v10 = vrot.slane %v498_v9, %v2034_v15 }
 0x11a   : > { %v513_v62 = vcombine.high %v505_v1, %v505_v1  ;;  %v2259_v22 = vmul.f32 %v1111_v24, %v692_v43  ;;  %v2262_v8 = vmul.f32 %v1126_v19, %v2252_v56  ;;  %v521_v28 = vrot.slane %v505_v1, %v2034_v15 }
 0x11b   : > { %v2267_v18 = vmul.f32 %v1127_v16, %v691_v12  ;;  %v514_v11 = vcombine.high %v512_v10, %v512_v10  ;;  %v528_v20 = vrot.slane %v512_v10, %v2034_v15  ;;  %v893_v43 = vcombine.high %v2198_v17, %v2198_v17 }
 0x11c   : > { %v535_v39 = vrot.slane %v513_v62, %v2034_v15  ;;  %v543_v48 = vcombine.high %v521_v28, %v521_v28  ;;  %v916_v24 = vrot.slane %v2083_v60, %v2034_v15  ;;  %v930_v9 = vrot.slane %v909_v2, %v2034_v15 }
 0x11d   : > { %v2282_v1 = vrot.slane %v514_v11, %v2034_v15  ;;  %v1175_v62 = vmul.f32 %v892_v27, %v497_v14  ;;  %v1176_v4 = vmul.f32 %v893_v43, %v521_v28  ;;  %v544_v3 = vcombine.high %v528_v20, %v528_v20 }
 0x11e   : > { %v545_v12 = vcombine.high %v535_v39, %v535_v39  ;;  %v931_v16 = vcombine.high %v916_v24, %v916_v24  ;;  %v932_v10 = vcombine.high %v930_v9, %v930_v9  ;;  %v1178_v17 = vmul.f32 %v916_v24, %v543_v48 }
 0x11f   : > { %v845_v59 = vrot.slane %v2067_v54, %v2034_v15  ;;  %v1249_v60 = vcombine.low %v2207_v25, %v2221_v63  ;;  %v1288_v11 = vcombine.low %v1175_v62, %v1176_v4  ;;  %v1256_v13 = vrot.slane %v1248_v0, %v2034_v15 }
 0x120   : > { %v1179_v58 = vmul.f32 %v930_v9, %v545_v12  ;;  %v1180_v2 = vmul.f32 %v931_v16, %v528_v20  ;;  %v1181_v19 = vmul.f32 %v932_v10, %v2282_v1  ;;  %v2474_v28 = vcombine.high %v2053_v44, %v2053_v44 }
 0x121   : > { %v1172_v14 = vmul.f32 %v845_v59, %v2183_v7  ;;  %v1263_v27 = vrot.slane %v1249_v60, %v2034_v15  ;;  %v2475_v25 = vcombine.high %v2051_v41, %v2051_v41  ;;  %v1287_v4 = vcombine.low %v2214_v61, %v2217_v32 }
 0x122   : > { %v908_v48 = vrot.slane %v2474_v28, %v2034_v15  ;;  %v1326_v43 = vcombine.low %v1178_v17, %v1179_v58  ;;  %v1327_v54 = vcombine.low %v1180_v2, %v1181_v19  ;;  %v1302_v0 = vrot.slane %v1288_v11, %v2034_v15 }
 0x123   : > { %v869_v63 = vrot.slane %v2475_v25, %v2034_v15  ;;  %v1270_v59 = vrot.slane %v1172_v14, %v2034_v15  ;;  %v1271_v7 = vcombine.low %v1256_v13, %v1263_v27  ;;  %v1295_v9 = vrot.slane %v1287_v4, %v2034_v15 }
 0x124   : > { %v923_v20 = vrot.slane %v908_v48, %v2034_v15  ;;  %v1334_v44 = vrot.slane %v1326_v43, %v2034_v15  ;;  %v1341_v58 = vrot.slane %v1327_v54, %v2034_v15  ;;  %v2476_v41 = vcombine.high %v2062_v51, %v2062_v51 }
 0x125   : > { %v884_v24 = vrot.slane %v869_v63, %v2034_v15  ;;  %v1278_v32 = vrot.slane %v1271_v7, %v2034_v15  ;;  %v1285_v19 = vrot.slane %v1270_v59, %v2034_v15  ;;  %v1443_v12 = vcombine.low %v2163_v30, %v2165_v31 }
 0x126   : > { %v1025_v61 = vrot.slane %v2476_v41, %v2034_v15  ;;  %v1182_v13 = vmul.f32 %v923_v20, %v544_v3  ;;  %v1349_v62 = vcombine.low %v1334_v44, %v1341_v58  ;;  %v1310_v10 = vcombine.low %v1295_v9, %v1302_v0 }
 0x127   : > { %v1177_v16 = vmul.f32 %v884_v24, %v535_v39  ;;  %v1286_v60 = vcombine.low %v1278_v32, %v1285_v19  ;;  %v1444_v51 = vcombine.low %v2177_v49, %v2171_v34  ;;  %v1451_v11 = vrot.slane %v1443_v12, %v2034_v15 }
 0x128   : > { %v1040_v17 = vrot.slane %v1025_v61, %v2034_v15  ;;  %v1348_v2 = vrot.slane %v1182_v13, %v2034_v15  ;;  %v1356_v14 = vrot.slane %v1349_v62, %v2034_v15  ;;  %v1317_v27 = vrot.slane %v1310_v10, %v2034_v15 }
 0x129   : > { %v1309_v3 = vrot.slane %v1177_v16, %v2034_v15  ;;  %v1569_v31 = vsel %vm1568_vm2, %v1286_v60, 0.0  ;;  %v1458_v28 = vrot.slane %v1444_v51, %v2034_v15  ;;  %v1010_v48 = vcombine.high %v2115_v26, %v2115_v26 }
 0x12a   : > { %v1197_v30 = vmul.f32 %v1040_v17, %v2169_v37  ;;  %v1363_v39 = vrot.slane %v1348_v2, %v2034_v15  ;;  %v546_v34 = vcombine.high %v2282_v1, %v2282_v1  ;;  %1570 = vadd.xlane.f32.xlu0 %v1569_v31  ;;  %v1404_v54 = vcombine.low %v2126_v35, %v2139_v45 }
 0x12b   : > { %v1324_v49 = vrot.slane %v1309_v3, %v2034_v15  ;;  %v1466_v63 = vcombine.low %v1451_v11, %v1458_v28  ;;  %v2477_v4 = vcombine.high %v2124_v33, %v2124_v33  ;;  %v2478_v26 = vcombine.high %v2060_v50, %v2060_v50 }
 0x12c   : > { %v1465_v43 = vrot.slane %v1197_v30, %v2034_v15  ;;  %v1364_v25 = vcombine.low %v1356_v14, %v1363_v39  ;;  %v1412_v20 = vrot.slane %v1404_v54, %v2034_v15  ;;  %v1426_v44 = vrot.slane %v2159_v21, %v2034_v15 }
 0x12d   : > { %v1191_v0 = vmul.f32 %v1010_v48, %v2477_v4  ;;  %v947_v59 = vrot.slane %v2478_v26, %v2034_v15  ;;  %v1325_v1 = vcombine.low %v1317_v27, %v1324_v49  ;;  %v1473_v45 = vrot.slane %v1466_v63, %v2034_v15 }
 0x12e   : > { %v1480_v7 = vrot.slane %v1465_v43, %v2034_v15  ;;  %v1575_v35 = vsel %vm1568_vm2, %v1364_v25, 0.0  ;;  %v1183_v24 = vmul.f32 %v2111_v23, %v546_v34  ;;  %v1366_v9 = vcombine.low %v2133_v42, %v2144_v53 }
 0x12f   : > { %v1405_v33 = vcombine.low %v2141_v46, %v1191_v0  ;;  %v962_v58 = vrot.slane %v947_v59, %v2034_v15  ;;  %1576 = vadd.xlane.f32.xlu1 %v1575_v35  ;;  %v1572_v50 = vsel %vm1568_vm2, %v1325_v1, 0.0  ;;  %v2479_v21 = vcombine.high %v2064_v52, %v2064_v52  ;;  %v2485_v35 = vld [vmem:[#allocation5_spill] sm:$0xff] }
 0x130   : > { %1573 = vadd.xlane.f32.xlu0 %v1572_v50  ;;  %v1481_v61 = vcombine.low %v1473_v45, %v1480_v7  ;;  %v2480_v46 = vcombine.high %v2118_v29, %v2118_v29  ;;  %v2481_v13 = vcombine.high %v2169_v37, %v2169_v37  ;;  %v1441_v42 = vrot.slane %v1426_v44, %v2034_v15 }
 0x131   : > { %v1064_v41 = vrot.slane %v2479_v21, %v2034_v15  ;;  %v1419_v32 = vrot.slane %v1405_v33, %v2034_v15  ;;  %v1365_v53 = vcombine.low %v1183_v24, %v2130_v40  ;;  %v2482_v12 = vcombine.low %v2248_v5, %v2254_v38 }
 0x132   : > { %v1187_v19 = vmul.f32 %v962_v58, %v2480_v46  ;;  %v1199_v23 = vmul.f32 %v2227_v6, %v2481_v13  ;;  %v1584_v16 = vsel %vm1568_vm2, %v1481_v61, 0.0  ;;  %v1380_v17 = vrot.slane %v1366_v9, %v2034_v15 }
 0x133   : > { %v1079_v52 = vrot.slane %v1064_v41, %v2034_v15  ;;  %v1497_v62 = vrot.slane %v2482_v12, %v2034_v15  ;;  %v1427_v29 = vcombine.low %v1412_v20, %v1419_v32  ;;  %1585 = vadd.xlane.f32.xlu1 %v1584_v16  ;;  %v1373_v6 = vrot.slane %v1365_v53, %v2034_v15 }
 0x134   : > { %v1387_v10 = vrot.slane %v1187_v19, %v2034_v15  ;;  %v1482_v37 = vcombine.low %v2174_v36, %v1199_v23  ;;  %v2483_v40 = vcombine.high %v2237_v55, %v2237_v55  ;;  %v1089_v38 = vcombine.high %v2075_v57, %v2075_v57 }
 0x135   : > { %v1434_v5 = vrot.slane %v1427_v29, %v2034_v15  ;;  %v693_v51 = vcombine.high %v2252_v56, %v2252_v56  ;;  %v1521_v36 = vcombine.low %v2259_v22, %v2256_v47  ;;  %v1388_v11 = vcombine.low %v1373_v6, %v1380_v17 }
 0x136   : > { %v1202_v60 = vmul.f32 %v1079_v52, %v2483_v40  ;;  %v1490_v2 = vrot.slane %v1482_v37, %v2034_v15  ;;  %v1103_v3 = vrot.slane %v1089_v38, %v2034_v15  ;;  %v1522_v55 = vcombine.low %v2262_v8, %v2267_v18 }
 0x137   : > { %v1442_v27 = vcombine.low %v1434_v5, %v1441_v42  ;;  %v1402_v57 = vrot.slane %v1387_v10, %v2034_v15  ;;  %v1395_v31 = vrot.slane %v1388_v11, %v2034_v15  ;;  %v1529_v56 = vrot.slane %v1521_v36, %v2034_v15 }
 0x138   : > { %v1504_v14 = vrot.slane %v1202_v60, %v2034_v15  ;;  %v1505_v30 = vcombine.low %v1490_v2, %v1497_v62  ;;  %v1118_v39 = vrot.slane %v1103_v3, %v2034_v15  ;;  %v1536_v47 = vrot.slane %v1522_v55, %v2034_v15 }
 0x139   : > { %v1581_v22 = vsel %vm1568_vm2, %v1442_v27, 0.0  ;;  %v1403_v18 = vcombine.low %v1395_v31, %v1402_v57  ;;  %v2484_v7 = vlaneseq }
 0x13a   : > { %v1512_v28 = vrot.slane %v1505_v30, %v2034_v15  ;;  %v1519_v48 = vrot.slane %v1504_v14, %v2034_v15  ;;  %1582 = vadd.xlane.f32.xlu0 %v1581_v22  ;;  %v1207_v8 = vmul.f32 %v1118_v39, %v693_v51  ;;  %v1544_v34 = vcombine.low %v1529_v56, %v1536_v47 }
 0x13b   : > { %v1578_v43 = vsel %vm1568_vm2, %v1403_v18, 0.0  ;;  %v1602_v20 = vand.u32 127, %v2484_v7 }
 0x13c   : > { %v1520_v49 = vcombine.low %v1512_v28, %v1519_v48  ;;  %v1543_v54 = vrot.slane %v1207_v8, %v2034_v15  ;;  %v1551_v25 = vrot.slane %v1544_v34, %v2034_v15  ;;  %1579 = vadd.xlane.f32.xlu1 %v1578_v43 }
 0x13d   : > { %v1605_v45 = vsub.s32 %v1602_v20, %v2485_v35 }
 0x13e   : > { %v1587_v63 = vsel %vm1568_vm2, %v1520_v49, 0.0  ;;  %v1558_v4 = vrot.slane %v1543_v54, %v2034_v15 }
 0x13f   : > { %1588 = vadd.xlane.f32.xlu0 %v1587_v63 }
 0x140   : > { %v1559_v0 = vcombine.low %v1551_v25, %v1558_v4 }
 0x142   : > { %v1590_v26 = vsel %vm1568_vm2, %v1559_v0, 0.0 }
 0x143   : > { %1591 = vadd.xlane.f32.xlu1 %v1590_v26 }
 0x1b7   : > { %v1571_v59 = vpop.xlane.xlu0 %1570 }
 0x1b8   : > { %v1606_v50 = vrot.slane %v1571_v59, %v1605_v45 }
 0x1bc   : > { %v1577_v1 = vpop.xlane.xlu1 %1576 }
 0x1bd   : > { %v1574_v44 = vpop.xlane.xlu0 %1573  ;;  %v1614_v15 = vrot.slane %v1577_v1, %v1605_v45 }
 0x1be   : > { %v1610_v58 = vrot.slane %v1574_v44, %v1605_v45 }
 0x1c0   : > { %v1586_v33 = vpop.xlane.xlu1 %1585  ;;  %v1636_v9 = vsel %vm1635_vm3, %v1610_v58, %v1606_v50 }
 0x1c1   : > { %v1638_v46 = vsel %vm1637_vm4, %v1614_v15, %v1636_v9  ;;  %v1626_v13 = vrot.slane %v1586_v33, %v1605_v45 }
 0x1c7   : > { %v1583_v24 = vpop.xlane.xlu0 %1582 }
 0x1c8   : > { %v1622_v32 = vrot.slane %v1583_v24, %v1605_v45 }
 0x1c9   : > { %v1580_v21 = vpop.xlane.xlu1 %1579 }
 0x1ca   : > { %v1618_v41 = vrot.slane %v1580_v21, %v1605_v45 }
 0x1cc   : > { %v1589_v61 = vpop.xlane.xlu0 %1588  ;;  %v1640_v23 = vsel %vm1639_vm5, %v1618_v41, %v1638_v46 }
 0x1cd   : > { %v1630_v19 = vrot.slane %v1589_v61, %v1605_v45  ;;  %v1642_v42 = vsel %vm1641_vm6, %v1622_v32, %v1640_v23 }
 0x1ce   : > { %v1644_v53 = vsel %vm1643_vm7, %v1626_v13, %v1642_v42 }
 0x1cf   : > { %v1646_v52 = vsel %vm1645_vm8, %v1630_v19, %v1644_v53 }
 0x1d0   : > { %v1592_v12 = vpop.xlane.xlu1 %1591 }
 0x1d1   : > { %v1634_v62 = vrot.slane %v1592_v12, %v1605_v45 }
 0x1d3   : > { %v1648_v16 = vsel %vm1647_vm9, %v1634_v62, %v1646_v52 }
 0x1d4   : > { %v1651_v29 = vsel %vm1650_vm10, %v1648_v16, 0.0 }
 0x1d5   : > { %1652 = vst [vmem:[%s258_s19] sm:$0xff] %v1651_v29 }
 0x1d6   : > { %1860 = shalt.err (!%p1857_p4)
}
 0x1d7   : > { %s1861_s13 = scalar_lea.hbm %s2418_s29, 128  ;;  %s1865_s16 = scalar_lea.hbm %s2468_s6, 256 }
 0x1d8   : > { %p1862_p7 = scmp.ne.s32.totalorder %s2418_s29, %s1861_s13  ;;  %p1866_p10 = scmp.lt.u32.totalorder %s2418_s29, %s2468_s6 }
 0x1d9   : > { %p1867_p11 = scmp.lt.u32.totalorder %s1865_s16, %s1861_s13  ;;  %p1869_p13 = scmp.lt.u32.totalorder %s1861_s13, %s2418_s29 }
 0x1da   : > { %p1863_p8 = pnand %p1862_p7, %p1988_p5 }
 0x1db   : > { %p1868_p12 = por %p1867_p11, %p1866_p10 }
 0x1dc   : > { %p1864_p9 = pneg %p1863_p8 }
 0x1dd   : > { %p1870_p0 = por %p1869_p13, %p1868_p12 }
 0x1df   : > { %p1871_p1 = pnand %p1870_p0, %p1864_p9 }
 0x1e1   : > { %1874 = shalt.err (!%p1871_p1)
}
 0x1e2   : > { %1798 = dma.vmem_to_hbm [thread:$0]  (%p1988_p5), %s2420_s20, 128, %s2418_s29, %s1654_s9  }
 0x1e3 PF: > { %p1804_p2 = scmp.ge.s32.totalorder %s1909_s24, 2  ;;  %s1679_s19 = sand.u32 1, %s1897_s21  }
 0x1e4   : > { %s1680_s26 = scalar_lea.sflag [#allocation3], %s1679_s19 }
 0x1e5   : > { %p1801_p3 = pnand %p1804_p2, %p1992_p6 }
 0x1e7   : > { %1892 = dma.done.wait (!%p1801_p3), %s1680_s26, 128  }
 0x1e8   : > { %1894 = vsyncadd (!%p1801_p3), %s1680_s26, 4294967168  ;;  %p16_p4 = scmp.ge.s32.totalorder %s1975_s27, 4   ;;  %s2486_s21 = smov %s1901_s22 }
 0x1e9   : > { %s2487_s22 = smov %s1905_s23  ;;  %s2488_s23 = smov %s1986_s30 }
 0x1ea   : > { %s2489_s24 = smov %s1975_s27  ;;  %18 = sbr.rel (!%p16_p4) target bundleno = 3 (0x3), region = 82 }
 0x1f1   :  { %1685 = vsyncpa [#allocation3], 1 }
 0x1f2   :  { %1687 = vsyncpa [#allocation3 + $0x1], 1 }

</bundles_post_ra>
